<compile_context>
chip_gen: v7x
topology: tpu7x:2x2x1
jax: 0.10.0
libtpu: 0.0.40
codegen_flags: <defaults>
</compile_context>

<pallas_src>
import functools

import jax
import jax.numpy as jnp
from jax import lax
from jax.experimental import pallas as pl
from jax.experimental.pallas import tpu as pltpu


def _skipgram_kernel(in_idx_ref, ctx_idx_ref,        # SMEM scalar-prefetch indices
                     emb_ref, ctx_ref,               # VMEM-resident embedding tables
                     out_ref,                        # (1, TB) f32 per-example losses
                     xg_ref, cg_ref,                 # VMEM gather scratch
                     *, n_pos, n_ctx, pn_pad, tb):
    base = pl.program_id(0) * tb

    # ---- Gather: rows come straight out of the VMEM-resident tables (pure VMEM
    #      loads/stores, no per-row HBM DMAs).  Rolled loop over the batch tile,
    #      static inner loop over the (small) number of context slots.
    def gather_row(i, carry):
        b = base + i
        xg_ref[i, 0, :] = emb_ref[in_idx_ref[b], :]
        for j in range(pn_pad):                      # static, pn_pad is small
            cg_ref[i, j, :] = ctx_ref[ctx_idx_ref[b * pn_pad + j], :]
        return carry

    lax.fori_loop(0, tb, gather_row, 0)

    # +1 for positive slots, -1 for negative slots; padded slots are masked out.
    chunk = 8
    j_iota = lax.broadcasted_iota(jnp.int32, (chunk, pn_pad), 1)
    sign = jnp.where(j_iota < n_pos, 1.0, -1.0).astype(jnp.float32)
    valid = j_iota < n_ctx

    # ---- Compute in f32, chunked over the batch tile so the (chunk, pn_pad, E)
    #      broadcast product stays small (no vreg spills at larger batch tiles).
    for c0 in range(0, tb, chunk):
        x = xg_ref[c0:c0 + chunk, 0, :].astype(jnp.float32)          # (chunk, E)
        ctx = cg_ref[c0:c0 + chunk, :, :].astype(jnp.float32)        # (chunk, PNp, E)
        scores = jnp.sum(ctx * x[:, None, :], axis=-1)               # (chunk, PNp)

        z = scores * sign
        # logsigmoid(z) = -softplus(-z), numerically stable.
        logsig = -(jnp.maximum(-z, 0.0) + jnp.log1p(jnp.exp(-jnp.abs(z))))
        contrib = jnp.where(valid, logsig, 0.0)
        # Per-example loss = -(posProb + negProb); batch mean done in the wrapper.
        out_ref[0, c0:c0 + chunk] = -jnp.sum(contrib, axis=1)


def skipgram_loss(emb_table, ctx_table, input_word, pos, neg, *, tb=128):
    """emb_table/ctx_table: (V, E) f32; input_word: (B,1); pos: (B,P); neg: (B,N)."""
    B = input_word.shape[0]
    P = int(pos.shape[1])
    N = int(neg.shape[1])
    V, E = emb_table.shape
    PN = P + N
    pn_pad = ((PN + 7) // 8) * 8                 # sublane-dense context scratch

    b8 = ((B + 7) // 8) * 8
    tb = max(8, min(((int(tb) + 7) // 8) * 8, b8))
    num_blocks = (b8 + tb - 1) // tb
    b_pad = num_blocks * tb

    # Pad index arrays: padded slots gather row 0 (never OOB); padded batch rows
    # are sliced off before the mean, padded context slots are masked in-kernel.
    in_idx = jnp.zeros((b_pad,), jnp.int32).at[:B].set(
        input_word.reshape(B).astype(jnp.int32))
    ctx_idx = jnp.zeros((b_pad, pn_pad), jnp.int32).at[:B, :PN].set(
        jnp.concatenate([pos, neg], axis=1).astype(jnp.int32))
    ctx_idx = ctx_idx.reshape(-1)                # flat 1-D -> cheap SMEM padding

    itemsize = jnp.dtype(emb_table.dtype).itemsize
    table_bytes = (emb_table.size + ctx_table.size) * itemsize
    scratch_bytes = (tb * E + tb * pn_pad * E) * itemsize
    vmem_limit = int(min(max(2 * table_bytes + 4 * scratch_bytes + (4 << 20),
                             32 << 20), 100 << 20))

    cost = pl.CostEstimate(
        flops=B * PN * (2 * E + 6),
        transcendentals=2 * B * PN,
        bytes_accessed=table_bytes + (in_idx.size + ctx_idx.size) * 4 + b_pad * 4,
    )

    kernel = functools.partial(_skipgram_kernel, n_pos=P, n_ctx=PN,
                               pn_pad=pn_pad, tb=tb)

    out = pl.pallas_call(
        kernel,
        out_shape=jax.ShapeDtypeStruct((num_blocks, tb), jnp.float32),
        grid_spec=pltpu.PrefetchScalarGridSpec(
            num_scalar_prefetch=2,
            grid=(num_blocks,),
            in_specs=[
                # Whole tables as VMEM blocks with a constant block index:
                # fetched once, resident across all grid steps (no re-DMA).
                pl.BlockSpec((V, E), lambda blk, *_: (0, 0)),
                pl.BlockSpec((V, E), lambda blk, *_: (0, 0)),
            ],
            out_specs=pl.BlockSpec((1, tb), lambda blk, *_: (blk, 0)),
            scratch_shapes=[
                pltpu.VMEM((tb, 1, E), emb_table.dtype),       # gathered input rows
                pltpu.VMEM((tb, pn_pad, E), ctx_table.dtype),  # gathered context rows
            ],
        ),
        compiler_params=pltpu.CompilerParams(
            dimension_semantics=("parallel",),     # v7x: shard batch tiles over 2 TCs
            vmem_limit_bytes=vmem_limit,
        ),
        cost_estimate=cost,
    )(in_idx, ctx_idx, emb_table, ctx_table)

    per_example = out.reshape(b_pad)[:B]
    return jnp.sum(per_example) / jnp.float32(B)


class SkipGramModelPallas:
    def __init__(self, voc_size, embed_size, key):
        k1, k2 = jax.random.split(key)
        # nn.Embedding default init ~ N(0, 1), float32 (matches PyTorch numerics).
        self.embedding = jax.random.normal(k1, (voc_size, embed_size), jnp.float32)
        self.embedding_context = jax.random.normal(k2, (voc_size, embed_size), jnp.float32)

    def __call__(self, input_word, pos, neg):
        return skipgram_loss(self.embedding, self.embedding_context, input_word, pos, neg)


if __name__ == "__main__":
    voc_size, embed_size = 64, 128
    batch, n_pos, n_neg = 8, 8, 16

    key = jax.random.PRNGKey(0)
    k_model, k_in, k_pos, k_neg = jax.random.split(key, 4)

    model = SkipGramModelPallas(voc_size, embed_size, k_model)

    input_word = jax.random.randint(k_in, (batch, 1), 0, voc_size, dtype=jnp.int32)
    pos = jax.random.randint(k_pos, (batch, n_pos), 0, voc_size, dtype=jnp.int32)
    neg = jax.random.randint(k_neg, (batch, n_neg), 0, voc_size, dtype=jnp.int32)

    loss = model(input_word, pos, neg)
    jax.block_until_ready(loss)

    # Pure-JAX reference of the same math (f32 throughout).
    def ref_loss():
        x = jnp.take(model.embedding, input_word[:, 0], axis=0)
        p = jnp.take(model.embedding_context, pos, axis=0)
        n = jnp.take(model.embedding_context, neg, axis=0)
        ps = jnp.sum(p * x[:, None, :], axis=-1)
        ns = -jnp.sum(n * x[:, None, :], axis=-1)
        ls = lambda z: -(jnp.maximum(-z, 0.0) + jnp.log1p(jnp.exp(-jnp.abs(z))))
        return jnp.mean(-(jnp.sum(ls(ps), axis=1) + jnp.sum(ls(ns), axis=1)))

    ref = jax.block_until_ready(ref_loss())
    assert jnp.allclose(loss, ref, rtol=1e-3, atol=1e-3), (loss, ref)
    print("KERNEL_OK")
</pallas_src>

<mosaic_0001>
module attributes {stable_mosaic.version = 11 : i64} {
  func.func @_skipgram_kernel(%arg0: i32, %arg1: memref<8xi32, #tpu.memory_space<smem>>, %arg2: memref<192xi32, #tpu.memory_space<smem>>, %arg3: memref<64x128xf32, #tpu.memory_space<vmem>>, %arg4: memref<64x128xf32, #tpu.memory_space<vmem>>, %arg5: memref<1x8xf32, #tpu.memory_space<vmem>>, %arg6: memref<8x1x128xf32, #tpu.memory_space<vmem>>, %arg7: memref<8x24x128xf32, #tpu.memory_space<vmem>>) attributes {dimension_semantics = [#tpu.dimension_semantics<parallel>], iteration_bounds = array<i64: 1>, scalar_prefetch = 2 : i64, scratch_operands = 2 : i64, tpu.core_type = #tpu.core_type<tc>, window_params = [{pipeline_mode = #tpu.pipeline_mode<synchronous>, transform_indices = @transform_0, window_bounds = array<i64: 64, 128>}, {pipeline_mode = #tpu.pipeline_mode<synchronous>, transform_indices = @transform_1, window_bounds = array<i64: 64, 128>}, {transform_indices = @transform_2, window_bounds = array<i64: 1, 8>}]} {
    %c8_i32 = arith.constant 8 : i32
    %0 = arith.muli %arg0, %c8_i32 : i32
    %c0_i32 = arith.constant 0 : i32
    %c8_i32_0 = arith.constant 8 : i32
    %1 = arith.addi %c0_i32, %c8_i32_0 : i32
    %c1_i32 = arith.constant 1 : i32
    scf.for %arg8 = %c0_i32 to %1 step %c1_i32  : i32 {
      %38 = arith.addi %0, %arg8 : i32
      %39 = arith.index_cast %38 : i32 to index
      %40 = memref.load %arg1[%39] : memref<8xi32, #tpu.memory_space<smem>>
      %41 = arith.index_cast %40 : i32 to index
      %c0_19 = arith.constant 0 : index
      %42 = vector.load %arg3[%41, %c0_19] : memref<64x128xf32, #tpu.memory_space<vmem>>, vector<1x128xf32>
      %43 = vector.shape_cast %42 : vector<1x128xf32> to vector<128xf32>
      %44 = arith.index_cast %arg8 : i32 to index
      %c0_20 = arith.constant 0 : index
      %c0_21 = arith.constant 0 : index
      %45 = vector.load %arg6[%44, %c0_20, %c0_21] : memref<8x1x128xf32, #tpu.memory_space<vmem>>, vector<1x1x128xf32>
      %46 = vector.shape_cast %45 : vector<1x1x128xf32> to vector<128xf32>
      %47 = vector.shape_cast %43 : vector<128xf32> to vector<1x1x128xf32>
      tpu.vector_store %arg6[%44, %c0_20, %c0_21], %47 {strides = array<i32>} : memref<8x1x128xf32, #tpu.memory_space<vmem>>, vector<1x1x128xf32>,
      %c24_i32_22 = arith.constant 24 : i32
      %48 = arith.muli %38, %c24_i32_22 : i32
      %c0_i32_23 = arith.constant 0 : i32
      %49 = arith.addi %48, %c0_i32_23 : i32
      %50 = arith.index_cast %49 : i32 to index
      %51 = memref.load %arg2[%50] : memref<192xi32, #tpu.memory_space<smem>>
      %52 = arith.index_cast %51 : i32 to index
      %c0_24 = arith.constant 0 : index
      %53 = vector.load %arg4[%52, %c0_24] : memref<64x128xf32, #tpu.memory_space<vmem>>, vector<1x128xf32>
      %54 = vector.shape_cast %53 : vector<1x128xf32> to vector<128xf32>
      %55 = arith.index_cast %arg8 : i32 to index
      %c0_25 = arith.constant 0 : index
      %c0_26 = arith.constant 0 : index
      %56 = vector.load %arg7[%55, %c0_25, %c0_26] : memref<8x24x128xf32, #tpu.memory_space<vmem>>, vector<1x1x128xf32>
      %57 = vector.shape_cast %56 : vector<1x1x128xf32> to vector<128xf32>
      %58 = vector.shape_cast %54 : vector<128xf32> to vector<1x1x128xf32>
      tpu.vector_store %arg7[%55, %c0_25, %c0_26], %58 {strides = array<i32>} : memref<8x24x128xf32, #tpu.memory_space<vmem>>, vector<1x1x128xf32>,
      %c24_i32_27 = arith.constant 24 : i32
      %59 = arith.muli %38, %c24_i32_27 : i32
      %c1_i32_28 = arith.constant 1 : i32
      %60 = arith.addi %59, %c1_i32_28 : i32
      %61 = arith.index_cast %60 : i32 to index
      %62 = memref.load %arg2[%61] : memref<192xi32, #tpu.memory_space<smem>>
      %63 = arith.index_cast %62 : i32 to index
      %c0_29 = arith.constant 0 : index
      %64 = vector.load %arg4[%63, %c0_29] : memref<64x128xf32, #tpu.memory_space<vmem>>, vector<1x128xf32>
      %65 = vector.shape_cast %64 : vector<1x128xf32> to vector<128xf32>
      %66 = arith.index_cast %arg8 : i32 to index
      %c1 = arith.constant 1 : index
      %c0_30 = arith.constant 0 : index
      %67 = vector.load %arg7[%66, %c1, %c0_30] : memref<8x24x128xf32, #tpu.memory_space<vmem>>, vector<1x1x128xf32>
      %68 = vector.shape_cast %67 : vector<1x1x128xf32> to vector<128xf32>
      %69 = vector.shape_cast %65 : vector<128xf32> to vector<1x1x128xf32>
      tpu.vector_store %arg7[%66, %c1, %c0_30], %69 {strides = array<i32>} : memref<8x24x128xf32, #tpu.memory_space<vmem>>, vector<1x1x128xf32>,
      %c24_i32_31 = arith.constant 24 : i32
      %70 = arith.muli %38, %c24_i32_31 : i32
      %c2_i32 = arith.constant 2 : i32
      %71 = arith.addi %70, %c2_i32 : i32
      %72 = arith.index_cast %71 : i32 to index
      %73 = memref.load %arg2[%72] : memref<192xi32, #tpu.memory_space<smem>>
      %74 = arith.index_cast %73 : i32 to index
      %c0_32 = arith.constant 0 : index
      %75 = vector.load %arg4[%74, %c0_32] : memref<64x128xf32, #tpu.memory_space<vmem>>, vector<1x128xf32>
      %76 = vector.shape_cast %75 : vector<1x128xf32> to vector<128xf32>
      %77 = arith.index_cast %arg8 : i32 to index
      %c2 = arith.constant 2 : index
      %c0_33 = arith.constant 0 : index
      %78 = vector.load %arg7[%77, %c2, %c0_33] : memref<8x24x128xf32, #tpu.memory_space<vmem>>, vector<1x1x128xf32>
      %79 = vector.shape_cast %78 : vector<1x1x128xf32> to vector<128xf32>
      %80 = vector.shape_cast %76 : vector<128xf32> to vector<1x1x128xf32>
      tpu.vector_store %arg7[%77, %c2, %c0_33], %80 {strides = array<i32>} : memref<8x24x128xf32, #tpu.memory_space<vmem>>, vector<1x1x128xf32>,
      %c24_i32_34 = arith.constant 24 : i32
      %81 = arith.muli %38, %c24_i32_34 : i32
      %c3_i32 = arith.constant 3 : i32
      %82 = arith.addi %81, %c3_i32 : i32
      %83 = arith.index_cast %82 : i32 to index
      %84 = memref.load %arg2[%83] : memref<192xi32, #tpu.memory_space<smem>>
      %85 = arith.index_cast %84 : i32 to index
      %c0_35 = arith.constant 0 : index
      %86 = vector.load %arg4[%85, %c0_35] : memref<64x128xf32, #tpu.memory_space<vmem>>, vector<1x128xf32>
      %87 = vector.shape_cast %86 : vector<1x128xf32> to vector<128xf32>
      %88 = arith.index_cast %arg8 : i32 to index
      %c3 = arith.constant 3 : index
      %c0_36 = arith.constant 0 : index
      %89 = vector.load %arg7[%88, %c3, %c0_36] : memref<8x24x128xf32, #tpu.memory_space<vmem>>, vector<1x1x128xf32>
      %90 = vector.shape_cast %89 : vector<1x1x128xf32> to vector<128xf32>
      %91 = vector.shape_cast %87 : vector<128xf32> to vector<1x1x128xf32>
      tpu.vector_store %arg7[%88, %c3, %c0_36], %91 {strides = array<i32>} : memref<8x24x128xf32, #tpu.memory_space<vmem>>, vector<1x1x128xf32>,
      %c24_i32_37 = arith.constant 24 : i32
      %92 = arith.muli %38, %c24_i32_37 : i32
      %c4_i32 = arith.constant 4 : i32
      %93 = arith.addi %92, %c4_i32 : i32
      %94 = arith.index_cast %93 : i32 to index
      %95 = memref.load %arg2[%94] : memref<192xi32, #tpu.memory_space<smem>>
      %96 = arith.index_cast %95 : i32 to index
      %c0_38 = arith.constant 0 : index
      %97 = vector.load %arg4[%96, %c0_38] : memref<64x128xf32, #tpu.memory_space<vmem>>, vector<1x128xf32>
      %98 = vector.shape_cast %97 : vector<1x128xf32> to vector<128xf32>
      %99 = arith.index_cast %arg8 : i32 to index
      %c4 = arith.constant 4 : index
      %c0_39 = arith.constant 0 : index
      %100 = vector.load %arg7[%99, %c4, %c0_39] : memref<8x24x128xf32, #tpu.memory_space<vmem>>, vector<1x1x128xf32>
      %101 = vector.shape_cast %100 : vector<1x1x128xf32> to vector<128xf32>
      %102 = vector.shape_cast %98 : vector<128xf32> to vector<1x1x128xf32>
      tpu.vector_store %arg7[%99, %c4, %c0_39], %102 {strides = array<i32>} : memref<8x24x128xf32, #tpu.memory_space<vmem>>, vector<1x1x128xf32>,
      %c24_i32_40 = arith.constant 24 : i32
      %103 = arith.muli %38, %c24_i32_40 : i32
      %c5_i32 = arith.constant 5 : i32
      %104 = arith.addi %103, %c5_i32 : i32
      %105 = arith.index_cast %104 : i32 to index
      %106 = memref.load %arg2[%105] : memref<192xi32, #tpu.memory_space<smem>>
      %107 = arith.index_cast %106 : i32 to index
      %c0_41 = arith.constant 0 : index
      %108 = vector.load %arg4[%107, %c0_41] : memref<64x128xf32, #tpu.memory_space<vmem>>, vector<1x128xf32>
      %109 = vector.shape_cast %108 : vector<1x128xf32> to vector<128xf32>
      %110 = arith.index_cast %arg8 : i32 to index
      %c5 = arith.constant 5 : index
      %c0_42 = arith.constant 0 : index
      %111 = vector.load %arg7[%110, %c5, %c0_42] : memref<8x24x128xf32, #tpu.memory_space<vmem>>, vector<1x1x128xf32>
      %112 = vector.shape_cast %111 : vector<1x1x128xf32> to vector<128xf32>
      %113 = vector.shape_cast %109 : vector<128xf32> to vector<1x1x128xf32>
      tpu.vector_store %arg7[%110, %c5, %c0_42], %113 {strides = array<i32>} : memref<8x24x128xf32, #tpu.memory_space<vmem>>, vector<1x1x128xf32>,
      %c24_i32_43 = arith.constant 24 : i32
      %114 = arith.muli %38, %c24_i32_43 : i32
      %c6_i32 = arith.constant 6 : i32
      %115 = arith.addi %114, %c6_i32 : i32
      %116 = arith.index_cast %115 : i32 to index
      %117 = memref.load %arg2[%116] : memref<192xi32, #tpu.memory_space<smem>>
      %118 = arith.index_cast %117 : i32 to index
      %c0_44 = arith.constant 0 : index
      %119 = vector.load %arg4[%118, %c0_44] : memref<64x128xf32, #tpu.memory_space<vmem>>, vector<1x128xf32>
      %120 = vector.shape_cast %119 : vector<1x128xf32> to vector<128xf32>
      %121 = arith.index_cast %arg8 : i32 to index
      %c6 = arith.constant 6 : index
      %c0_45 = arith.constant 0 : index
      %122 = vector.load %arg7[%121, %c6, %c0_45] : memref<8x24x128xf32, #tpu.memory_space<vmem>>, vector<1x1x128xf32>
      %123 = vector.shape_cast %122 : vector<1x1x128xf32> to vector<128xf32>
      %124 = vector.shape_cast %120 : vector<128xf32> to vector<1x1x128xf32>
      tpu.vector_store %arg7[%121, %c6, %c0_45], %124 {strides = array<i32>} : memref<8x24x128xf32, #tpu.memory_space<vmem>>, vector<1x1x128xf32>,
      %c24_i32_46 = arith.constant 24 : i32
      %125 = arith.muli %38, %c24_i32_46 : i32
      %c7_i32 = arith.constant 7 : i32
      %126 = arith.addi %125, %c7_i32 : i32
      %127 = arith.index_cast %126 : i32 to index
      %128 = memref.load %arg2[%127] : memref<192xi32, #tpu.memory_space<smem>>
      %129 = arith.index_cast %128 : i32 to index
      %c0_47 = arith.constant 0 : index
      %130 = vector.load %arg4[%129, %c0_47] : memref<64x128xf32, #tpu.memory_space<vmem>>, vector<1x128xf32>
      %131 = vector.shape_cast %130 : vector<1x128xf32> to vector<128xf32>
      %132 = arith.index_cast %arg8 : i32 to index
      %c7 = arith.constant 7 : index
      %c0_48 = arith.constant 0 : index
      %133 = vector.load %arg7[%132, %c7, %c0_48] : memref<8x24x128xf32, #tpu.memory_space<vmem>>, vector<1x1x128xf32>
      %134 = vector.shape_cast %133 : vector<1x1x128xf32> to vector<128xf32>
      %135 = vector.shape_cast %131 : vector<128xf32> to vector<1x1x128xf32>
      tpu.vector_store %arg7[%132, %c7, %c0_48], %135 {strides = array<i32>} : memref<8x24x128xf32, #tpu.memory_space<vmem>>, vector<1x1x128xf32>,
      %c24_i32_49 = arith.constant 24 : i32
      %136 = arith.muli %38, %c24_i32_49 : i32
      %c8_i32_50 = arith.constant 8 : i32
      %137 = arith.addi %136, %c8_i32_50 : i32
      %138 = arith.index_cast %137 : i32 to index
      %139 = memref.load %arg2[%138] : memref<192xi32, #tpu.memory_space<smem>>
      %140 = arith.index_cast %139 : i32 to index
      %c0_51 = arith.constant 0 : index
      %141 = vector.load %arg4[%140, %c0_51] : memref<64x128xf32, #tpu.memory_space<vmem>>, vector<1x128xf32>
      %142 = vector.shape_cast %141 : vector<1x128xf32> to vector<128xf32>
      %143 = arith.index_cast %arg8 : i32 to index
      %c8 = arith.constant 8 : index
      %c0_52 = arith.constant 0 : index
      %144 = vector.load %arg7[%143, %c8, %c0_52] : memref<8x24x128xf32, #tpu.memory_space<vmem>>, vector<1x1x128xf32>
      %145 = vector.shape_cast %144 : vector<1x1x128xf32> to vector<128xf32>
      %146 = vector.shape_cast %142 : vector<128xf32> to vector<1x1x128xf32>
      tpu.vector_store %arg7[%143, %c8, %c0_52], %146 {strides = array<i32>} : memref<8x24x128xf32, #tpu.memory_space<vmem>>, vector<1x1x128xf32>,
      %c24_i32_53 = arith.constant 24 : i32
      %147 = arith.muli %38, %c24_i32_53 : i32
      %c9_i32 = arith.constant 9 : i32
      %148 = arith.addi %147, %c9_i32 : i32
      %149 = arith.index_cast %148 : i32 to index
      %150 = memref.load %arg2[%149] : memref<192xi32, #tpu.memory_space<smem>>
      %151 = arith.index_cast %150 : i32 to index
      %c0_54 = arith.constant 0 : index
      %152 = vector.load %arg4[%151, %c0_54] : memref<64x128xf32, #tpu.memory_space<vmem>>, vector<1x128xf32>
      %153 = vector.shape_cast %152 : vector<1x128xf32> to vector<128xf32>
      %154 = arith.index_cast %arg8 : i32 to index
      %c9 = arith.constant 9 : index
      %c0_55 = arith.constant 0 : index
      %155 = vector.load %arg7[%154, %c9, %c0_55] : memref<8x24x128xf32, #tpu.memory_space<vmem>>, vector<1x1x128xf32>
      %156 = vector.shape_cast %155 : vector<1x1x128xf32> to vector<128xf32>
      %157 = vector.shape_cast %153 : vector<128xf32> to vector<1x1x128xf32>
      tpu.vector_store %arg7[%154, %c9, %c0_55], %157 {strides = array<i32>} : memref<8x24x128xf32, #tpu.memory_space<vmem>>, vector<1x1x128xf32>,
      %c24_i32_56 = arith.constant 24 : i32
      %158 = arith.muli %38, %c24_i32_56 : i32
      %c10_i32 = arith.constant 10 : i32
      %159 = arith.addi %158, %c10_i32 : i32
      %160 = arith.index_cast %159 : i32 to index
      %161 = memref.load %arg2[%160] : memref<192xi32, #tpu.memory_space<smem>>
      %162 = arith.index_cast %161 : i32 to index
      %c0_57 = arith.constant 0 : index
      %163 = vector.load %arg4[%162, %c0_57] : memref<64x128xf32, #tpu.memory_space<vmem>>, vector<1x128xf32>
      %164 = vector.shape_cast %163 : vector<1x128xf32> to vector<128xf32>
      %165 = arith.index_cast %arg8 : i32 to index
      %c10 = arith.constant 10 : index
      %c0_58 = arith.constant 0 : index
      %166 = vector.load %arg7[%165, %c10, %c0_58] : memref<8x24x128xf32, #tpu.memory_space<vmem>>, vector<1x1x128xf32>
      %167 = vector.shape_cast %166 : vector<1x1x128xf32> to vector<128xf32>
      %168 = vector.shape_cast %164 : vector<128xf32> to vector<1x1x128xf32>
      tpu.vector_store %arg7[%165, %c10, %c0_58], %168 {strides = array<i32>} : memref<8x24x128xf32, #tpu.memory_space<vmem>>, vector<1x1x128xf32>,
      %c24_i32_59 = arith.constant 24 : i32
      %169 = arith.muli %38, %c24_i32_59 : i32
      %c11_i32 = arith.constant 11 : i32
      %170 = arith.addi %169, %c11_i32 : i32
      %171 = arith.index_cast %170 : i32 to index
      %172 = memref.load %arg2[%171] : memref<192xi32, #tpu.memory_space<smem>>
      %173 = arith.index_cast %172 : i32 to index
      %c0_60 = arith.constant 0 : index
      %174 = vector.load %arg4[%173, %c0_60] : memref<64x128xf32, #tpu.memory_space<vmem>>, vector<1x128xf32>
      %175 = vector.shape_cast %174 : vector<1x128xf32> to vector<128xf32>
      %176 = arith.index_cast %arg8 : i32 to index
      %c11 = arith.constant 11 : index
      %c0_61 = arith.constant 0 : index
      %177 = vector.load %arg7[%176, %c11, %c0_61] : memref<8x24x128xf32, #tpu.memory_space<vmem>>, vector<1x1x128xf32>
      %178 = vector.shape_cast %177 : vector<1x1x128xf32> to vector<128xf32>
      %179 = vector.shape_cast %175 : vector<128xf32> to vector<1x1x128xf32>
      tpu.vector_store %arg7[%176, %c11, %c0_61], %179 {strides = array<i32>} : memref<8x24x128xf32, #tpu.memory_space<vmem>>, vector<1x1x128xf32>,
      %c24_i32_62 = arith.constant 24 : i32
      %180 = arith.muli %38, %c24_i32_62 : i32
      %c12_i32 = arith.constant 12 : i32
      %181 = arith.addi %180, %c12_i32 : i32
      %182 = arith.index_cast %181 : i32 to index
      %183 = memref.load %arg2[%182] : memref<192xi32, #tpu.memory_space<smem>>
      %184 = arith.index_cast %183 : i32 to index
      %c0_63 = arith.constant 0 : index
      %185 = vector.load %arg4[%184, %c0_63] : memref<64x128xf32, #tpu.memory_space<vmem>>, vector<1x128xf32>
      %186 = vector.shape_cast %185 : vector<1x128xf32> to vector<128xf32>
      %187 = arith.index_cast %arg8 : i32 to index
      %c12 = arith.constant 12 : index
      %c0_64 = arith.constant 0 : index
      %188 = vector.load %arg7[%187, %c12, %c0_64] : memref<8x24x128xf32, #tpu.memory_space<vmem>>, vector<1x1x128xf32>
      %189 = vector.shape_cast %188 : vector<1x1x128xf32> to vector<128xf32>
      %190 = vector.shape_cast %186 : vector<128xf32> to vector<1x1x128xf32>
      tpu.vector_store %arg7[%187, %c12, %c0_64], %190 {strides = array<i32>} : memref<8x24x128xf32, #tpu.memory_space<vmem>>, vector<1x1x128xf32>,
      %c24_i32_65 = arith.constant 24 : i32
      %191 = arith.muli %38, %c24_i32_65 : i32
      %c13_i32 = arith.constant 13 : i32
      %192 = arith.addi %191, %c13_i32 : i32
      %193 = arith.index_cast %192 : i32 to index
      %194 = memref.load %arg2[%193] : memref<192xi32, #tpu.memory_space<smem>>
      %195 = arith.index_cast %194 : i32 to index
      %c0_66 = arith.constant 0 : index
      %196 = vector.load %arg4[%195, %c0_66] : memref<64x128xf32, #tpu.memory_space<vmem>>, vector<1x128xf32>
      %197 = vector.shape_cast %196 : vector<1x128xf32> to vector<128xf32>
      %198 = arith.index_cast %arg8 : i32 to index
      %c13 = arith.constant 13 : index
      %c0_67 = arith.constant 0 : index
      %199 = vector.load %arg7[%198, %c13, %c0_67] : memref<8x24x128xf32, #tpu.memory_space<vmem>>, vector<1x1x128xf32>
      %200 = vector.shape_cast %199 : vector<1x1x128xf32> to vector<128xf32>
      %201 = vector.shape_cast %197 : vector<128xf32> to vector<1x1x128xf32>
      tpu.vector_store %arg7[%198, %c13, %c0_67], %201 {strides = array<i32>} : memref<8x24x128xf32, #tpu.memory_space<vmem>>, vector<1x1x128xf32>,
      %c24_i32_68 = arith.constant 24 : i32
      %202 = arith.muli %38, %c24_i32_68 : i32
      %c14_i32 = arith.constant 14 : i32
      %203 = arith.addi %202, %c14_i32 : i32
      %204 = arith.index_cast %203 : i32 to index
      %205 = memref.load %arg2[%204] : memref<192xi32, #tpu.memory_space<smem>>
      %206 = arith.index_cast %205 : i32 to index
      %c0_69 = arith.constant 0 : index
      %207 = vector.load %arg4[%206, %c0_69] : memref<64x128xf32, #tpu.memory_space<vmem>>, vector<1x128xf32>
      %208 = vector.shape_cast %207 : vector<1x128xf32> to vector<128xf32>
      %209 = arith.index_cast %arg8 : i32 to index
      %c14 = arith.constant 14 : index
      %c0_70 = arith.constant 0 : index
      %210 = vector.load %arg7[%209, %c14, %c0_70] : memref<8x24x128xf32, #tpu.memory_space<vmem>>, vector<1x1x128xf32>
      %211 = vector.shape_cast %210 : vector<1x1x128xf32> to vector<128xf32>
      %212 = vector.shape_cast %208 : vector<128xf32> to vector<1x1x128xf32>
      tpu.vector_store %arg7[%209, %c14, %c0_70], %212 {strides = array<i32>} : memref<8x24x128xf32, #tpu.memory_space<vmem>>, vector<1x1x128xf32>,
      %c24_i32_71 = arith.constant 24 : i32
      %213 = arith.muli %38, %c24_i32_71 : i32
      %c15_i32 = arith.constant 15 : i32
      %214 = arith.addi %213, %c15_i32 : i32
      %215 = arith.index_cast %214 : i32 to index
      %216 = memref.load %arg2[%215] : memref<192xi32, #tpu.memory_space<smem>>
      %217 = arith.index_cast %216 : i32 to index
      %c0_72 = arith.constant 0 : index
      %218 = vector.load %arg4[%217, %c0_72] : memref<64x128xf32, #tpu.memory_space<vmem>>, vector<1x128xf32>
      %219 = vector.shape_cast %218 : vector<1x128xf32> to vector<128xf32>
      %220 = arith.index_cast %arg8 : i32 to index
      %c15 = arith.constant 15 : index
      %c0_73 = arith.constant 0 : index
      %221 = vector.load %arg7[%220, %c15, %c0_73] : memref<8x24x128xf32, #tpu.memory_space<vmem>>, vector<1x1x128xf32>
      %222 = vector.shape_cast %221 : vector<1x1x128xf32> to vector<128xf32>
      %223 = vector.shape_cast %219 : vector<128xf32> to vector<1x1x128xf32>
      tpu.vector_store %arg7[%220, %c15, %c0_73], %223 {strides = array<i32>} : memref<8x24x128xf32, #tpu.memory_space<vmem>>, vector<1x1x128xf32>,
      %c24_i32_74 = arith.constant 24 : i32
      %224 = arith.muli %38, %c24_i32_74 : i32
      %c16_i32 = arith.constant 16 : i32
      %225 = arith.addi %224, %c16_i32 : i32
      %226 = arith.index_cast %225 : i32 to index
      %227 = memref.load %arg2[%226] : memref<192xi32, #tpu.memory_space<smem>>
      %228 = arith.index_cast %227 : i32 to index
      %c0_75 = arith.constant 0 : index
      %229 = vector.load %arg4[%228, %c0_75] : memref<64x128xf32, #tpu.memory_space<vmem>>, vector<1x128xf32>
      %230 = vector.shape_cast %229 : vector<1x128xf32> to vector<128xf32>
      %231 = arith.index_cast %arg8 : i32 to index
      %c16 = arith.constant 16 : index
      %c0_76 = arith.constant 0 : index
      %232 = vector.load %arg7[%231, %c16, %c0_76] : memref<8x24x128xf32, #tpu.memory_space<vmem>>, vector<1x1x128xf32>
      %233 = vector.shape_cast %232 : vector<1x1x128xf32> to vector<128xf32>
      %234 = vector.shape_cast %230 : vector<128xf32> to vector<1x1x128xf32>
      tpu.vector_store %arg7[%231, %c16, %c0_76], %234 {strides = array<i32>} : memref<8x24x128xf32, #tpu.memory_space<vmem>>, vector<1x1x128xf32>,
      %c24_i32_77 = arith.constant 24 : i32
      %235 = arith.muli %38, %c24_i32_77 : i32
      %c17_i32 = arith.constant 17 : i32
      %236 = arith.addi %235, %c17_i32 : i32
      %237 = arith.index_cast %236 : i32 to index
      %238 = memref.load %arg2[%237] : memref<192xi32, #tpu.memory_space<smem>>
      %239 = arith.index_cast %238 : i32 to index
      %c0_78 = arith.constant 0 : index
      %240 = vector.load %arg4[%239, %c0_78] : memref<64x128xf32, #tpu.memory_space<vmem>>, vector<1x128xf32>
      %241 = vector.shape_cast %240 : vector<1x128xf32> to vector<128xf32>
      %242 = arith.index_cast %arg8 : i32 to index
      %c17 = arith.constant 17 : index
      %c0_79 = arith.constant 0 : index
      %243 = vector.load %arg7[%242, %c17, %c0_79] : memref<8x24x128xf32, #tpu.memory_space<vmem>>, vector<1x1x128xf32>
      %244 = vector.shape_cast %243 : vector<1x1x128xf32> to vector<128xf32>
      %245 = vector.shape_cast %241 : vector<128xf32> to vector<1x1x128xf32>
      tpu.vector_store %arg7[%242, %c17, %c0_79], %245 {strides = array<i32>} : memref<8x24x128xf32, #tpu.memory_space<vmem>>, vector<1x1x128xf32>,
      %c24_i32_80 = arith.constant 24 : i32
      %246 = arith.muli %38, %c24_i32_80 : i32
      %c18_i32 = arith.constant 18 : i32
      %247 = arith.addi %246, %c18_i32 : i32
      %248 = arith.index_cast %247 : i32 to index
      %249 = memref.load %arg2[%248] : memref<192xi32, #tpu.memory_space<smem>>
      %250 = arith.index_cast %249 : i32 to index
      %c0_81 = arith.constant 0 : index
      %251 = vector.load %arg4[%250, %c0_81] : memref<64x128xf32, #tpu.memory_space<vmem>>, vector<1x128xf32>
      %252 = vector.shape_cast %251 : vector<1x128xf32> to vector<128xf32>
      %253 = arith.index_cast %arg8 : i32 to index
      %c18 = arith.constant 18 : index
      %c0_82 = arith.constant 0 : index
      %254 = vector.load %arg7[%253, %c18, %c0_82] : memref<8x24x128xf32, #tpu.memory_space<vmem>>, vector<1x1x128xf32>
      %255 = vector.shape_cast %254 : vector<1x1x128xf32> to vector<128xf32>
      %256 = vector.shape_cast %252 : vector<128xf32> to vector<1x1x128xf32>
      tpu.vector_store %arg7[%253, %c18, %c0_82], %256 {strides = array<i32>} : memref<8x24x128xf32, #tpu.memory_space<vmem>>, vector<1x1x128xf32>,
      %c24_i32_83 = arith.constant 24 : i32
      %257 = arith.muli %38, %c24_i32_83 : i32
      %c19_i32 = arith.constant 19 : i32
      %258 = arith.addi %257, %c19_i32 : i32
      %259 = arith.index_cast %258 : i32 to index
      %260 = memref.load %arg2[%259] : memref<192xi32, #tpu.memory_space<smem>>
      %261 = arith.index_cast %260 : i32 to index
      %c0_84 = arith.constant 0 : index
      %262 = vector.load %arg4[%261, %c0_84] : memref<64x128xf32, #tpu.memory_space<vmem>>, vector<1x128xf32>
      %263 = vector.shape_cast %262 : vector<1x128xf32> to vector<128xf32>
      %264 = arith.index_cast %arg8 : i32 to index
      %c19 = arith.constant 19 : index
      %c0_85 = arith.constant 0 : index
      %265 = vector.load %arg7[%264, %c19, %c0_85] : memref<8x24x128xf32, #tpu.memory_space<vmem>>, vector<1x1x128xf32>
      %266 = vector.shape_cast %265 : vector<1x1x128xf32> to vector<128xf32>
      %267 = vector.shape_cast %263 : vector<128xf32> to vector<1x1x128xf32>
      tpu.vector_store %arg7[%264, %c19, %c0_85], %267 {strides = array<i32>} : memref<8x24x128xf32, #tpu.memory_space<vmem>>, vector<1x1x128xf32>,
      %c24_i32_86 = arith.constant 24 : i32
      %268 = arith.muli %38, %c24_i32_86 : i32
      %c20_i32 = arith.constant 20 : i32
      %269 = arith.addi %268, %c20_i32 : i32
      %270 = arith.index_cast %269 : i32 to index
      %271 = memref.load %arg2[%270] : memref<192xi32, #tpu.memory_space<smem>>
      %272 = arith.index_cast %271 : i32 to index
      %c0_87 = arith.constant 0 : index
      %273 = vector.load %arg4[%272, %c0_87] : memref<64x128xf32, #tpu.memory_space<vmem>>, vector<1x128xf32>
      %274 = vector.shape_cast %273 : vector<1x128xf32> to vector<128xf32>
      %275 = arith.index_cast %arg8 : i32 to index
      %c20 = arith.constant 20 : index
      %c0_88 = arith.constant 0 : index
      %276 = vector.load %arg7[%275, %c20, %c0_88] : memref<8x24x128xf32, #tpu.memory_space<vmem>>, vector<1x1x128xf32>
      %277 = vector.shape_cast %276 : vector<1x1x128xf32> to vector<128xf32>
      %278 = vector.shape_cast %274 : vector<128xf32> to vector<1x1x128xf32>
      tpu.vector_store %arg7[%275, %c20, %c0_88], %278 {strides = array<i32>} : memref<8x24x128xf32, #tpu.memory_space<vmem>>, vector<1x1x128xf32>,
      %c24_i32_89 = arith.constant 24 : i32
      %279 = arith.muli %38, %c24_i32_89 : i32
      %c21_i32 = arith.constant 21 : i32
      %280 = arith.addi %279, %c21_i32 : i32
      %281 = arith.index_cast %280 : i32 to index
      %282 = memref.load %arg2[%281] : memref<192xi32, #tpu.memory_space<smem>>
      %283 = arith.index_cast %282 : i32 to index
      %c0_90 = arith.constant 0 : index
      %284 = vector.load %arg4[%283, %c0_90] : memref<64x128xf32, #tpu.memory_space<vmem>>, vector<1x128xf32>
      %285 = vector.shape_cast %284 : vector<1x128xf32> to vector<128xf32>
      %286 = arith.index_cast %arg8 : i32 to index
      %c21 = arith.constant 21 : index
      %c0_91 = arith.constant 0 : index
      %287 = vector.load %arg7[%286, %c21, %c0_91] : memref<8x24x128xf32, #tpu.memory_space<vmem>>, vector<1x1x128xf32>
      %288 = vector.shape_cast %287 : vector<1x1x128xf32> to vector<128xf32>
      %289 = vector.shape_cast %285 : vector<128xf32> to vector<1x1x128xf32>
      tpu.vector_store %arg7[%286, %c21, %c0_91], %289 {strides = array<i32>} : memref<8x24x128xf32, #tpu.memory_space<vmem>>, vector<1x1x128xf32>,
      %c24_i32_92 = arith.constant 24 : i32
      %290 = arith.muli %38, %c24_i32_92 : i32
      %c22_i32 = arith.constant 22 : i32
      %291 = arith.addi %290, %c22_i32 : i32
      %292 = arith.index_cast %291 : i32 to index
      %293 = memref.load %arg2[%292] : memref<192xi32, #tpu.memory_space<smem>>
      %294 = arith.index_cast %293 : i32 to index
      %c0_93 = arith.constant 0 : index
      %295 = vector.load %arg4[%294, %c0_93] : memref<64x128xf32, #tpu.memory_space<vmem>>, vector<1x128xf32>
      %296 = vector.shape_cast %295 : vector<1x128xf32> to vector<128xf32>
      %297 = arith.index_cast %arg8 : i32 to index
      %c22 = arith.constant 22 : index
      %c0_94 = arith.constant 0 : index
      %298 = vector.load %arg7[%297, %c22, %c0_94] : memref<8x24x128xf32, #tpu.memory_space<vmem>>, vector<1x1x128xf32>
      %299 = vector.shape_cast %298 : vector<1x1x128xf32> to vector<128xf32>
      %300 = vector.shape_cast %296 : vector<128xf32> to vector<1x1x128xf32>
      tpu.vector_store %arg7[%297, %c22, %c0_94], %300 {strides = array<i32>} : memref<8x24x128xf32, #tpu.memory_space<vmem>>, vector<1x1x128xf32>,
      %c24_i32_95 = arith.constant 24 : i32
      %301 = arith.muli %38, %c24_i32_95 : i32
      %c23_i32 = arith.constant 23 : i32
      %302 = arith.addi %301, %c23_i32 : i32
      %303 = arith.index_cast %302 : i32 to index
      %304 = memref.load %arg2[%303] : memref<192xi32, #tpu.memory_space<smem>>
      %305 = arith.index_cast %304 : i32 to index
      %c0_96 = arith.constant 0 : index
      %306 = vector.load %arg4[%305, %c0_96] : memref<64x128xf32, #tpu.memory_space<vmem>>, vector<1x128xf32>
      %307 = vector.shape_cast %306 : vector<1x128xf32> to vector<128xf32>
      %308 = arith.index_cast %arg8 : i32 to index
      %c23 = arith.constant 23 : index
      %c0_97 = arith.constant 0 : index
      %309 = vector.load %arg7[%308, %c23, %c0_97] : memref<8x24x128xf32, #tpu.memory_space<vmem>>, vector<1x1x128xf32>
      %310 = vector.shape_cast %309 : vector<1x1x128xf32> to vector<128xf32>
      %311 = vector.shape_cast %307 : vector<128xf32> to vector<1x1x128xf32>
      tpu.vector_store %arg7[%308, %c23, %c0_97], %311 {strides = array<i32>} : memref<8x24x128xf32, #tpu.memory_space<vmem>>, vector<1x1x128xf32>,
    }
    %c8_i32_1 = arith.constant 8 : i32
    %2 = tpu.iota {dimensions = array<i32: 1>} : vector<8x24xi32>
    %c8_i32_2 = arith.constant 8 : i32
    %3 = vector.broadcast %c8_i32_2 : i32 to vector<8x24xi32>
    %4 = arith.cmpi slt, %2, %3 : vector<8x24xi32>
    %cst = arith.constant 1.000000e+00 : f32
    %cst_3 = arith.constant -1.000000e+00 : f32
    %5 = vector.broadcast %cst : f32 to vector<8x24xf32>
    %6 = vector.broadcast %cst_3 : f32 to vector<8x24xf32>
    %7 = arith.select %4, %5, %6 : vector<8x24xi1>, vector<8x24xf32>
    %c24_i32 = arith.constant 24 : i32
    %8 = vector.broadcast %c24_i32 : i32 to vector<8x24xi32>
    %9 = arith.cmpi slt, %2, %8 : vector<8x24xi32>
    %c0 = arith.constant 0 : index
    %c0_4 = arith.constant 0 : index
    %c0_5 = arith.constant 0 : index
    %10 = vector.load %arg6[%c0, %c0_4, %c0_5] : memref<8x1x128xf32, #tpu.memory_space<vmem>>, vector<8x1x128xf32>
    %11 = vector.shape_cast %10 : vector<8x1x128xf32> to vector<8x128xf32>
    %c0_6 = arith.constant 0 : index
    %c0_7 = arith.constant 0 : index
    %c0_8 = arith.constant 0 : index
    %12 = vector.load %arg7[%c0_6, %c0_7, %c0_8] : memref<8x24x128xf32, #tpu.memory_space<vmem>>, vector<8x24x128xf32>
    %13 = vector.shape_cast %11 : vector<8x128xf32> to vector<8x1x128xf32>
    %14 = vector.broadcast %13 : vector<8x1x128xf32> to vector<8x24x128xf32>
    %15 = arith.mulf %12, %14 : vector<8x24x128xf32>
    %cst_9 = arith.constant dense<0.000000e+00> : vector<8x24xf32>
    %16 = vector.multi_reduction <add>, %15, %cst_9 [2] : vector<8x24x128xf32> to vector<8x24xf32>
    %17 = arith.mulf %16, %7 : vector<8x24xf32>
    %cst_10 = arith.constant 0.000000e+00 : f32
    %18 = vector.broadcast %cst_10 : f32 to vector<8x24xf32>
    %19 = arith.subf %18, %17 : vector<8x24xf32>
    %cst_11 = arith.constant 0.000000e+00 : f32
    %20 = vector.broadcast %cst_11 : f32 to vector<8x24xf32>
    %21 = arith.maximumf %19, %20 : vector<8x24xf32>
    %22 = math.absf %17 : vector<8x24xf32>
    %cst_12 = arith.constant 0.000000e+00 : f32
    %23 = vector.broadcast %cst_12 : f32 to vector<8x24xf32>
    %24 = arith.subf %23, %22 : vector<8x24xf32>
    %25 = math.exp %24 : vector<8x24xf32>
    %26 = math.log1p %25 : vector<8x24xf32>
    %27 = arith.addf %21, %26 : vector<8x24xf32>
    %cst_13 = arith.constant 0.000000e+00 : f32
    %28 = vector.broadcast %cst_13 : f32 to vector<8x24xf32>
    %29 = arith.subf %28, %27 : vector<8x24xf32>
    %cst_14 = arith.constant 0.000000e+00 : f32
    %30 = vector.broadcast %cst_14 : f32 to vector<8x24xf32>
    %31 = arith.select %9, %29, %30 : vector<8x24xi1>, vector<8x24xf32>
    %cst_15 = arith.constant dense<0.000000e+00> : vector<8xf32>
    %32 = vector.multi_reduction <add>, %31, %cst_15 [1] : vector<8x24xf32> to vector<8xf32>
    %cst_16 = arith.constant 0.000000e+00 : f32
    %33 = vector.broadcast %cst_16 : f32 to vector<8xf32>
    %34 = arith.subf %33, %32 : vector<8xf32>
    %c0_17 = arith.constant 0 : index
    %c0_18 = arith.constant 0 : index
    %35 = vector.load %arg5[%c0_17, %c0_18] : memref<1x8xf32, #tpu.memory_space<vmem>>, vector<1x8xf32>
    %36 = vector.shape_cast %35 : vector<1x8xf32> to vector<8xf32>
    %37 = vector.shape_cast %34 : vector<8xf32> to vector<1x8xf32>
    tpu.vector_store %arg5[%c0_17, %c0_18], %37 {strides = array<i32>} : memref<1x8xf32, #tpu.memory_space<vmem>>, vector<1x8xf32>,
    return
  }
  func.func @transform_0(%arg0: i32, %arg1: memref<8xi32, #tpu.memory_space<smem>>, %arg2: memref<192xi32, #tpu.memory_space<smem>>) -> (i32, i32) {
    %c0_i32 = arith.constant 0 : i32
    %c0_i32_0 = arith.constant 0 : i32
    %c0_i32_1 = arith.constant 0 : i32
    return %c0_i32, %c0_i32_0 : i32, i32
  }
  func.func @transform_1(%arg0: i32, %arg1: memref<8xi32, #tpu.memory_space<smem>>, %arg2: memref<192xi32, #tpu.memory_space<smem>>) -> (i32, i32) {
    %c0_i32 = arith.constant 0 : i32
    %c0_i32_0 = arith.constant 0 : i32
    %c0_i32_1 = arith.constant 0 : i32
    return %c0_i32, %c0_i32_0 : i32, i32
  }
  func.func @transform_2(%arg0: i32, %arg1: memref<8xi32, #tpu.memory_space<smem>>, %arg2: memref<192xi32, #tpu.memory_space<smem>>) -> (i32, i32) {
    %c0_i32 = arith.constant 0 : i32
    %c0_i32_0 = arith.constant 0 : i32
    return %arg0, %c0_i32 : i32, i32
  }
}

</mosaic_0001>

<bundles_post_ra>
// kernel: tpu_custom_call.1
= control target key start
LH: loop header
LB: loop body
LE: loop exit
PB: predicated region body
PF: predicated region fallthrough
CT: control target
= control target key end

     0   :  { %s1814_s0 = inlined_call_operand.hbm [shape: s32[8], index: 0, kind: input, shape index: {}]   ;;  %s1815_s2 = inlined_call_operand.hbm [shape: f32[64,128], index: 2, kind: input, shape index: {}]   ;;  %s1816_s3 = inlined_call_operand.hbm [shape: f32[64,128], index: 3, kind: input, shape index: {}]   ;;  %s1817_s4 = inlined_call_operand.hbm [shape: f32[1,8], index: 4, kind: output, shape index: {}]   ;;  %s1818_s1 = inlined_call_operand.vmem [shape: s32[192], index: 1, kind: input, shape index: {}]  }
   0x1   :  { %s1202_s17 = scalar_lea.hbm %s1814_s0, 16 }
   0x2   :  { %p1203_p0 = scmp.ne.s32.totalorder %s1814_s0, %s1202_s17  ;;  %p1206_p1 = scmp.lt.u32.totalorder %s1202_s17, %s1814_s0 }
   0x4   :  { %p1208_p2 = pnand %p1206_p1, %p1203_p0 }
   0x6   :  { %1211 = shalt.err (!%p1208_p2)  }
   0x7   :  { %s1306_s22 = smov [#allocation5]   ;;  %s11_s27 = sshll.u32 %s1818_s1, 4  ;;  %s12_s27 = int_to_ptr.vmem [resolvable:$true] %s11_s27 }
   0x8   :  { %10 = dma.hbm_to_smem %s1814_s0, 16, %s1306_s22, [#allocation4] }
   0x9   :  { %s1212_s28 = scalar_lea.vmem %s12_s27, 32  ;;  %p1217_p4 = scmp.lt.s32.totalorder %s12_s27, %s12_s27 }
   0xa   :  { %p1213_p3 = scmp.ne.s32.totalorder %s12_s27, %s1212_s28  ;;  %p1218_p5 = scmp.lt.s32.totalorder %s1212_s28, %s1212_s28 }
   0xc   :  { %p1219_p6 = por %p1218_p5, %p1217_p4 }
   0xe   :  { %p1220_p7 = pnand %p1219_p6, %p1213_p3 }
  0x10   :  { %1223 = shalt.err (!%p1220_p7)  }
  0x11   :  { %s1307_s29 = smov [#allocation6]  }
  0x12   :  { %14 = dma.vmem_to_smem %s12_s27, 32, %s1307_s29, [#allocation4] }
  0x13   :  { %1294 = dma.done.wait [#allocation4], 48 }
  0x14   :  { %1295 = vsyncadd [#allocation4], 4294967248 }
  0x15   :  { %16 = sfence }
  0x16   :  { %17 = vsyncpa [#allocation8], 0 }
  0x17   :  { %18 = vsyncpa [#allocation11], 0 }
  0x18   :  { %19 = vsyncpa [#allocation9], 0  ;;  %s1308_s0 = smov [#allocation7]   ;;  %s1224_s6 = scalar_lea.hbm %s1815_s2, 1024 }
  0x19   :  { %s25_s30 = sshll.u32 %s1308_s0, 4  ;;  %p1225_p8 = scmp.ne.s32.totalorder %s1815_s2, %s1224_s6  ;;  %s26_s30 = int_to_ptr.vmem [resolvable:$true] %s25_s30 }
  0x1a   :  { %p1228_p9 = scmp.lt.u32.totalorder %s1224_s6, %s1815_s2 }
  0x1c   :  { %p1230_p10 = pnand %p1228_p9, %p1225_p8 }
  0x1e   :  { %1233 = shalt.err (!%p1230_p10)
}
  0x1f   :  { %s1234_s11 = scalar_lea.vmem %s26_s30, 1024  ;;  %p1239_p12 = scmp.lt.s32.totalorder %s26_s30, %s26_s30 }
  0x20   :  { %p1235_p11 = scmp.ne.s32.totalorder %s26_s30, %s1234_s11  ;;  %p1240_p13 = scmp.lt.s32.totalorder %s1234_s11, %s1234_s11 }
  0x22   :  { %p1241_p0 = por %p1240_p13, %p1239_p12 }
  0x24   :  { %p1242_p1 = pnand %p1241_p0, %p1235_p11 }
  0x26   :  { %1245 = shalt.err (!%p1242_p1)
}
  0x27   :  { %s1309_s12 = smov 128   ;;  %s1310_s13 = smov 8  }
  0x28   :  { %31 = dma.hbm_to_vmem [thread:$0]  %s1815_s2, 1024, %s26_s30, [#allocation8], %s1309_s12, %s1309_s12, %s1310_s13  }
  0x29   :  { %s1311_s16 = smov [#allocation10]   ;;  %s1246_s20 = scalar_lea.hbm %s1816_s3, 1024 }
  0x2a   :  { %s37_s17 = sshll.u32 %s1311_s16, 4  ;;  %p1247_p2 = scmp.ne.s32.totalorder %s1816_s3, %s1246_s20  ;;  %s38_s17 = int_to_ptr.vmem [resolvable:$true] %s37_s17 }
  0x2b   :  { %p1250_p3 = scmp.lt.u32.totalorder %s1246_s20, %s1816_s3 }
  0x2d   :  { %p1252_p4 = pnand %p1250_p3, %p1247_p2 }
  0x2f   :  { %1255 = shalt.err (!%p1252_p4)
}
  0x30   :  { %s1256_s25 = scalar_lea.vmem %s38_s17, 1024  ;;  %p1261_p6 = scmp.lt.s32.totalorder %s38_s17, %s38_s17 }
  0x31   :  { %p1257_p5 = scmp.ne.s32.totalorder %s38_s17, %s1256_s25  ;;  %p1262_p7 = scmp.lt.s32.totalorder %s1256_s25, %s1256_s25 }
  0x33   :  { %p1263_p8 = por %p1262_p7, %p1261_p6 }
  0x35   :  { %p1264_p9 = pnand %p1263_p8, %p1257_p5 }
  0x37   :  { %1267 = shalt.err (!%p1264_p9)
}
  0x38   :  { %43 = dma.hbm_to_vmem [thread:$0]  %s1816_s3, 1024, %s38_s17, [#allocation11], %s1309_s12, %s1309_s12, %s1310_s13  }
  0x39   :  { %1296 = dma.done.wait [#allocation8], 1024  }
  0x3a   :  { %1297 = vsyncadd [#allocation8], 4294966272 }
  0x3b   :  { %1298 = dma.done.wait [#allocation11], 1024  }
  0x3c   :  { %1299 = vsyncadd [#allocation11], 4294966272  ;;  %s1379_s27 = smov 0  }
  0x3d LB: > { %s58_s28 = sld [smem:[#allocation5 + %s1304_s27]]  ;;  %s1386_s29 = smul.u32 24, %s1304_s27  ;;  %s1304_s27 = sphi %s1379_s27, %s56_s27  }
  0x3e   : > { %s61_s10 = scalar_lea.vmem [#allocation2], %s1304_s27  ;;  %s56_s27 = sadd.s32 1, %s1304_s27  }
  0x3f   : > { %s64_s3 = sld [smem:[#allocation6 + %s1386_s29]]  ;;  %s70_s0 = sadd.s32 1, %s1386_s29 }
  0x40   : > { %s75_s30 = sadd.s32 2, %s1386_s29  ;;  %s71_s1 = sld [smem:[#allocation6 + %s70_s0]] }
  0x41   : > { %s76_s5 = sld [smem:[#allocation6 + %s75_s30]]  ;;  %s80_s6 = sadd.s32 3, %s1386_s29 }
  0x42   : > { %s81_s8 = sld [smem:[#allocation6 + %s80_s6]]  ;;  %s85_s9 = sadd.s32 4, %s1386_s29 }
  0x43   : > { %s59_s7 = scalar_lea.vmem [#allocation7], %s58_s28  ;;  %s86_s11 = sld [smem:[#allocation6 + %s85_s9]] }
  0x44   : > { %v60_v0 = vld [vmem:[%s59_s7] sm:$0x1]  ;;  %s90_s12 = sadd.s32 5, %s1386_s29  ;;  %s95_s15 = sadd.s32 6, %s1386_s29 }
  0x45   : > { %62 = vst [vmem:[%s61_s10] sm:$0x1] %v60_v0  ;;  %s91_s13 = sld [smem:[#allocation6 + %s90_s12]]  ;;  %s65_s14 = scalar_lea.vmem [#allocation10], %s64_s3 }
  0x46   : > { %v66_v1 = vld [vmem:[%s65_s14] sm:$0x1]  ;;  %s100_s16 = sadd.s32 7, %s1386_s29  ;;  %s1398_s17 = scalar_lea.vmem [#allocation3], %s1386_s29 }
  0x47   : > { %69 = vst [vmem:[%s1398_s17] sm:$0x1] %v66_v1  ;;  %s72_s18 = scalar_lea.vmem [#allocation10], %s71_s1  ;;  %s77_s19 = scalar_lea.vmem [#allocation10], %s76_s5 }
  0x48   : > { %v73_v2 = vld [vmem:[%s72_s18] sm:$0x1]  ;;  %s96_s20 = sld [smem:[#allocation6 + %s95_s15]]  ;;  %s105_s22 = sadd.s32 8, %s1386_s29 }
  0x49   : > { %v78_v3 = vld [vmem:[%s77_s19] sm:$0x1]  ;;  %s101_s21 = sld [smem:[#allocation6 + %s100_s16]]  ;;  %74 = vst [vmem:[%s1398_s17 + $0x1] sm:$0x1] %v73_v2  ;;  %s82_s23 = scalar_lea.vmem [#allocation10], %s81_s8 }
  0x4a   : > { %79 = vst [vmem:[%s1398_s17 + $0x2] sm:$0x1] %v78_v3  ;;  %v83_v4 = vld [vmem:[%s82_s23] sm:$0x1]  ;;  %s106_s24 = sld [smem:[#allocation6 + %s105_s22]]  ;;  %s87_s25 = scalar_lea.vmem [#allocation10], %s86_s11 }
  0x4b   : > { %84 = vst [vmem:[%s1398_s17 + $0x3] sm:$0x1] %v83_v4  ;;  %v88_v5 = vld [vmem:[%s87_s25] sm:$0x1]  ;;  %s110_s2 = sadd.s32 9, %s1386_s29  ;;  %s92_s26 = scalar_lea.vmem [#allocation10], %s91_s13 }
  0x4c   : > { %89 = vst [vmem:[%s1398_s17 + $0x4] sm:$0x1] %v88_v5  ;;  %v93_v6 = vld [vmem:[%s92_s26] sm:$0x1]  ;;  %s111_s28 = sld [smem:[#allocation6 + %s110_s2]]  ;;  %s115_s3 = sadd.s32 10, %s1386_s29 }
  0x4d   : > { %94 = vst [vmem:[%s1398_s17 + $0x5] sm:$0x1] %v93_v6  ;;  %s116_s0 = sld [smem:[#allocation6 + %s115_s3]]  ;;  %s120_s30 = sadd.s32 11, %s1386_s29 }
  0x4e   : > { %s97_s1 = scalar_lea.vmem [#allocation10], %s96_s20  ;;  %s121_s6 = sld [smem:[#allocation6 + %s120_s30]] }
  0x4f   : > { %v98_v7 = vld [vmem:[%s97_s1] sm:$0x1]  ;;  %s102_s5 = scalar_lea.vmem [#allocation10], %s101_s21  ;;  %s125_s7 = sadd.s32 12, %s1386_s29 }
  0x50   : > { %v103_v8 = vld [vmem:[%s102_s5] sm:$0x1]  ;;  %99 = vst [vmem:[%s1398_s17 + $0x6] sm:$0x1] %v98_v7  ;;  %s126_s8 = sld [smem:[#allocation6 + %s125_s7]]  ;;  %s107_s9 = scalar_lea.vmem [#allocation10], %s106_s24 }
  0x51   : > { %104 = vst [vmem:[%s1398_s17 + $0x7] sm:$0x1] %v103_v8  ;;  %v108_v9 = vld [vmem:[%s107_s9] sm:$0x1]  ;;  %s130_s10 = sadd.s32 13, %s1386_s29  ;;  %s135_s11 = sadd.s32 14, %s1386_s29 }
  0x52   : > { %109 = vst [vmem:[%s1398_s17 + $0x8] sm:$0x1] %v108_v9  ;;  %s131_s12 = sld [smem:[#allocation6 + %s130_s10]]  ;;  %s112_s13 = scalar_lea.vmem [#allocation10], %s111_s28 }
  0x53   : > { %v113_v10 = vld [vmem:[%s112_s13] sm:$0x1]  ;;  %s136_s14 = sld [smem:[#allocation6 + %s135_s11]]  ;;  %s117_s15 = scalar_lea.vmem [#allocation10], %s116_s0 }
  0x54   : > { %114 = vst [vmem:[%s1398_s17 + $0x9] sm:$0x1] %v113_v10  ;;  %v118_v11 = vld [vmem:[%s117_s15] sm:$0x1]  ;;  %s140_s16 = sadd.s32 15, %s1386_s29  ;;  %s145_s18 = sadd.s32 16, %s1386_s29 }
  0x55   : > { %119 = vst [vmem:[%s1398_s17 + $0xa] sm:$0x1] %v118_v11  ;;  %s141_s19 = sld [smem:[#allocation6 + %s140_s16]]  ;;  %s122_s20 = scalar_lea.vmem [#allocation10], %s121_s6 }
  0x56   : > { %v123_v12 = vld [vmem:[%s122_s20] sm:$0x1]  ;;  %s146_s21 = sld [smem:[#allocation6 + %s145_s18]]  ;;  %s127_s22 = scalar_lea.vmem [#allocation10], %s126_s8 }
  0x57   : > { %124 = vst [vmem:[%s1398_s17 + $0xb] sm:$0x1] %v123_v12  ;;  %v128_v13 = vld [vmem:[%s127_s22] sm:$0x1]  ;;  %s150_s23 = sadd.s32 17, %s1386_s29  ;;  %s155_s24 = sadd.s32 18, %s1386_s29 }
  0x58   : > { %129 = vst [vmem:[%s1398_s17 + $0xc] sm:$0x1] %v128_v13  ;;  %s151_s25 = sld [smem:[#allocation6 + %s150_s23]]  ;;  %s132_s2 = scalar_lea.vmem [#allocation10], %s131_s12 }
  0x59   : > { %v133_v14 = vld [vmem:[%s132_s2] sm:$0x1]  ;;  %s156_s26 = sld [smem:[#allocation6 + %s155_s24]]  ;;  %s137_s28 = scalar_lea.vmem [#allocation10], %s136_s14 }
  0x5a   : > { %134 = vst [vmem:[%s1398_s17 + $0xd] sm:$0x1] %v133_v14  ;;  %v138_v15 = vld [vmem:[%s137_s28] sm:$0x1]  ;;  %s160_s3 = sadd.s32 19, %s1386_s29  ;;  %s165_s0 = sadd.s32 20, %s1386_s29 }
  0x5b   : > { %139 = vst [vmem:[%s1398_s17 + $0xe] sm:$0x1] %v138_v15  ;;  %s161_s30 = sld [smem:[#allocation6 + %s160_s3]]  ;;  %s142_s1 = scalar_lea.vmem [#allocation10], %s141_s19 }
  0x5c   : > { %v143_v16 = vld [vmem:[%s142_s1] sm:$0x1]  ;;  %s166_s5 = sld [smem:[#allocation6 + %s165_s0]]  ;;  %s147_s6 = scalar_lea.vmem [#allocation10], %s146_s21 }
  0x5d   : > { %144 = vst [vmem:[%s1398_s17 + $0xf] sm:$0x1] %v143_v16  ;;  %v148_v17 = vld [vmem:[%s147_s6] sm:$0x1]  ;;  %s170_s7 = sadd.s32 21, %s1386_s29  ;;  %s175_s8 = sadd.s32 22, %s1386_s29 }
  0x5e   : > { %149 = vst [vmem:[%s1398_s17 + $0x10] sm:$0x1] %v148_v17  ;;  %s171_s9 = sld [smem:[#allocation6 + %s170_s7]]  ;;  %s152_s10 = scalar_lea.vmem [#allocation10], %s151_s25 }
  0x5f   : > { %v153_v18 = vld [vmem:[%s152_s10] sm:$0x1]  ;;  %s176_s11 = sld [smem:[#allocation6 + %s175_s8]]  ;;  %s157_s12 = scalar_lea.vmem [#allocation10], %s156_s26 }
  0x60   : > { %154 = vst [vmem:[%s1398_s17 + $0x11] sm:$0x1] %v153_v18  ;;  %v158_v19 = vld [vmem:[%s157_s12] sm:$0x1]  ;;  %s180_s13 = sadd.s32 23, %s1386_s29  ;;  %p53_p10 = scmp.ge.s32.totalorder %s56_s27, 8  }
  0x61   : > { %159 = vst [vmem:[%s1398_s17 + $0x12] sm:$0x1] %v158_v19  ;;  %s181_s14 = sld [smem:[#allocation6 + %s180_s13]]  ;;  %s162_s15 = scalar_lea.vmem [#allocation10], %s161_s30  ;;  %v1080_v25 = vld [vmem:[#allocation2 + $0x1] ss:$0 sm:$0xff] (%p53_p10)  ;;  %v1819_v17 = vlaneseq (%p53_p10) }
  0x62   : > { %v163_v20 = vld [vmem:[%s162_s15] sm:$0x1]  ;;  %s167_s16 = scalar_lea.vmem [#allocation10], %s166_s5  ;;  %v1079_v27 = vld [vmem:[#allocation2] ss:$0 sm:$0xff] (%p53_p10)  ;;  %v1312_v19 = vmov (%p53_p10), -1.0  }
  0x63   : > { %164 = vst [vmem:[%s1398_s17 + $0x13] sm:$0x1] %v163_v20  ;;  %v168_v21 = vld [vmem:[%s167_s16] sm:$0x1]  ;;  %55 = sbr.rel (!%p53_p10) target bundleno = 61 (0x3d), region = 70  ;;  %v1444_v18 = vand.u32 (%p53_p10), 127, %v1819_v17 }
  0x64   : > { %169 = vst [vmem:[%s1398_s17 + $0x14] sm:$0x1] %v168_v21  ;;  %s172_s18 = scalar_lea.vmem [#allocation10], %s171_s9  ;;  %v1081_v39 = vld [vmem:[#allocation2 + $0x2] ss:$0 sm:$0xff] (%p53_p10)  ;;  %v1313_v21 = vmov (%p53_p10), 0  }
  0x65   : > { %v173_v22 = vld [vmem:[%s172_s18] sm:$0x1]  ;;  %s177_s19 = scalar_lea.vmem [#allocation10], %s176_s11  ;;  %v1082_v44 = vld [vmem:[#allocation2 + $0x3] ss:$0 sm:$0xff] (%p53_p10)  ;;  %vm187_vm0 = vcmp.lt.s32.totalorder (%p53_p10), %v1444_v18, 8  ;;  %1105 = vset.pattern.permute.xlu0 (%p53_p10), %v1313_v21  ;;  %1104 = vset.pattern.permute.xlu1 (%p53_p10), %v1313_v21 }
  0x66   : > { %174 = vst [vmem:[%s1398_s17 + $0x15] sm:$0x1] %v173_v22  ;;  %v178_v23 = vld [vmem:[%s177_s19] sm:$0x1]  ;;  %v1083_v53 = vld [vmem:[#allocation2 + $0x4] ss:$0 sm:$0xff] (%p53_p10) }
  0x67   : > { %179 = vst [vmem:[%s1398_s17 + $0x16] sm:$0x1] %v178_v23  ;;  %s182_s20 = scalar_lea.vmem [#allocation10], %s181_s14  ;;  %v1084_v58 = vld [vmem:[#allocation2 + $0x5] ss:$0 sm:$0xff] (%p53_p10)  ;;  %v188_v20 = vsel (%p53_p10), %vm187_vm0, 1.0, %v1312_v19 }
  0x68   : > { %v183_v24 = vld [vmem:[%s182_s20] sm:$0x1]  ;;  %v1085_v3 = vld [vmem:[#allocation2 + $0x6] ss:$0 sm:$0xff] (%p53_p10)  ;;  %v1086_v8 = vld [vmem:[#allocation2 + $0x7] ss:$0 sm:$0xff] (%p53_p10) }
  0x69   : > { %184 = vst [vmem:[%s1398_s17 + $0x17] sm:$0x1] %v183_v24  ;;  %s1314_s27 = smov (%p53_p10), [#allocation12]  }
  0x6a   :  { %s1036_s29 = sshll.u32 %s1314_s27, 4  ;;  %s1037_s29 = int_to_ptr.vmem [resolvable:$true] %s1036_s29 }
  0x6b   :  { %s1268_s17 = scalar_lea.vmem %s1037_s29, 16  ;;  %s1272_s21 = scalar_lea.vmem %s1037_s29, 32 }
  0x6c   :  { %p1269_p11 = scmp.ne.s32.totalorder %s1037_s29, %s1268_s17  ;;  %p1273_p12 = scmp.lt.s32.totalorder %s1037_s29, %s1037_s29 }
  0x6d   :  { %p1274_p13 = scmp.lt.s32.totalorder %s1272_s21, %s1268_s17 }
  0x6f   :  { %p1275_p0 = por %p1274_p13, %p1273_p12 }
  0x70   :  { %v201_v26 = vld [vmem:[#allocation3 + $0x18] sm:$0xff]  ;;  %v198_v29 = vld [vmem:[#allocation3] sm:$0xff]  ;;  %v199_v31 = vld [vmem:[#allocation3 + $0x8] sm:$0xff] }
  0x71   :  { %v273_v28 = vmul.f32 %v1080_v25, %v201_v26  ;;  %v202_v30 = vld [vmem:[#allocation3 + $0x20] sm:$0xff]  ;;  %v270_v32 = vmul.f32 %v1079_v27, %v198_v29  ;;  %v271_v34 = vmul.f32 %v1079_v27, %v199_v31  ;;  %v203_v35 = vld [vmem:[#allocation3 + $0x28] sm:$0xff]  ;;  %v200_v36 = vld [vmem:[#allocation3 + $0x10] sm:$0xff]  ;;  %p1276_p1 = pnand %p1275_p0, %p1269_p11 }
  0x72   :  { %v274_v33 = vmul.f32 %v1080_v25, %v202_v30  ;;  %v275_v37 = vmul.f32 %v1080_v25, %v203_v35  ;;  %v272_v38 = vmul.f32 %v1079_v27, %v200_v36  ;;  %v205_v40 = vld [vmem:[#allocation3 + $0x38] sm:$0xff]  ;;  %v204_v41 = vld [vmem:[#allocation3 + $0x30] sm:$0xff]  ;;  %v207_v45 = vld [vmem:[#allocation3 + $0x48] sm:$0xff] }
  0x73   :  { %300 = vadd.xlane.f32.xlu1 %v273_v28  ;;  %294 = vadd.xlane.f32.xlu0 %v270_v32  ;;  %v277_v42 = vmul.f32 %v1081_v39, %v205_v40  ;;  %v276_v43 = vmul.f32 %v1081_v39, %v204_v41  ;;  %v206_v46 = vld [vmem:[#allocation3 + $0x40] sm:$0xff]  ;;  %v279_v47 = vmul.f32 %v1082_v44, %v207_v45  ;;  %v209_v49 = vld [vmem:[#allocation3 + $0x58] sm:$0xff]  ;;  %v208_v50 = vld [vmem:[#allocation3 + $0x50] sm:$0xff] }
  0x74   :  { %v278_v48 = vmul.f32 %v1081_v39, %v206_v46  ;;  %v281_v51 = vmul.f32 %v1082_v44, %v209_v49  ;;  %v280_v52 = vmul.f32 %v1082_v44, %v208_v50  ;;  %v211_v54 = vld [vmem:[#allocation3 + $0x68] sm:$0xff]  ;;  %v210_v55 = vld [vmem:[#allocation3 + $0x60] sm:$0xff]  ;;  %v213_v59 = vld [vmem:[#allocation3 + $0x78] sm:$0xff] }
  0x75   :  { %v283_v56 = vmul.f32 %v1083_v53, %v211_v54  ;;  %v282_v57 = vmul.f32 %v1083_v53, %v210_v55  ;;  %v212_v60 = vld [vmem:[#allocation3 + $0x70] sm:$0xff]  ;;  %v285_v61 = vmul.f32 %v1084_v58, %v213_v59  ;;  %v215_v63 = vld [vmem:[#allocation3 + $0x88] sm:$0xff]  ;;  %v214_v0 = vld [vmem:[#allocation3 + $0x80] sm:$0xff] }
  0x76   :  { %v284_v62 = vmul.f32 %v1083_v53, %v212_v60  ;;  %v287_v1 = vmul.f32 %v1084_v58, %v215_v63  ;;  %v286_v2 = vmul.f32 %v1084_v58, %v214_v0  ;;  %v217_v4 = vld [vmem:[#allocation3 + $0x98] sm:$0xff]  ;;  %v216_v5 = vld [vmem:[#allocation3 + $0x90] sm:$0xff]  ;;  %v219_v9 = vld [vmem:[#allocation3 + $0xa8] sm:$0xff] }
  0x77   :  { %302 = vadd.xlane.f32.xlu1 %v274_v33  ;;  %296 = vadd.xlane.f32.xlu0 %v271_v34  ;;  %v289_v6 = vmul.f32 %v1085_v3, %v217_v4  ;;  %v288_v7 = vmul.f32 %v1085_v3, %v216_v5  ;;  %v218_v10 = vld [vmem:[#allocation3 + $0xa0] sm:$0xff]  ;;  %v291_v11 = vmul.f32 %v1086_v8, %v219_v9  ;;  %v221_v13 = vld [vmem:[#allocation3 + $0xb8] sm:$0xff]  ;;  %v220_v14 = vld [vmem:[#allocation3 + $0xb0] sm:$0xff] }
  0x78   :  { %v290_v12 = vmul.f32 %v1085_v3, %v218_v10  ;;  %v293_v15 = vmul.f32 %v1086_v8, %v221_v13  ;;  %v292_v16 = vmul.f32 %v1086_v8, %v220_v14 }
  0x7b   :  { %304 = vadd.xlane.f32.xlu1 %v275_v37  ;;  %298 = vadd.xlane.f32.xlu0 %v272_v38 }
  0x7f   :  { %308 = vadd.xlane.f32.xlu1 %v277_v42  ;;  %306 = vadd.xlane.f32.xlu0 %v276_v43 }
  0x83   :  { %312 = vadd.xlane.f32.xlu1 %v279_v47  ;;  %310 = vadd.xlane.f32.xlu0 %v278_v48 }
  0x87   :  { %316 = vadd.xlane.f32.xlu1 %v281_v51  ;;  %314 = vadd.xlane.f32.xlu0 %v280_v52 }
  0x8b   :  { %320 = vadd.xlane.f32.xlu1 %v283_v56  ;;  %318 = vadd.xlane.f32.xlu0 %v282_v57 }
  0x8f   :  { %324 = vadd.xlane.f32.xlu1 %v285_v61  ;;  %322 = vadd.xlane.f32.xlu0 %v284_v62 }
  0x93   :  { %328 = vadd.xlane.f32.xlu1 %v287_v1  ;;  %326 = vadd.xlane.f32.xlu0 %v286_v2 }
  0x97   :  { %332 = vadd.xlane.f32.xlu1 %v289_v6  ;;  %330 = vadd.xlane.f32.xlu0 %v288_v7 }
  0x9b   :  { %336 = vadd.xlane.f32.xlu1 %v291_v11  ;;  %334 = vadd.xlane.f32.xlu0 %v290_v12 }
  0x9f   :  { %340 = vadd.xlane.f32.xlu1 %v293_v15  ;;  %338 = vadd.xlane.f32.xlu0 %v292_v16 }
  0xb0   :  { %348 = vbcast.lane.b32.xlu1 %v188_v20, 264 }
  0xb4   :  { %352 = vbcast.lane.b32.xlu1 %v188_v20, 272 }
  0xb5   :  { %344 = vbcast.lane.b32.xlu0 %v188_v20, 256 }
 0x100   :  { %v301_v22 = vpop.xlane.xlu1 %300  ;;  %v295_v23 = vpop.xlane.xlu0 %294 }
 0x104   :  { %v303_v24 = vpop.xlane.xlu1 %302  ;;  %v297_v25 = vpop.xlane.xlu0 %296 }
 0x108   :  { %v305_v26 = vpop.xlane.xlu1 %304  ;;  %v299_v27 = vpop.xlane.xlu0 %298 }
 0x10c   :  { %v309_v28 = vpop.xlane.xlu1 %308  ;;  %v307_v29 = vpop.xlane.xlu0 %306 }
 0x110   :  { %v1447_v30 = vpop.xlane.xlu1 %312  ;;  %v311_v31 = vpop.xlane.xlu0 %310 }
 0x114   :  { %v1449_v32 = vpop.xlane.xlu1 %316  ;;  %v315_v33 = vpop.xlane.xlu0 %314 }
 0x118   :  { %v1451_v34 = vpop.xlane.xlu1 %320  ;;  %v1453_v35 = vpop.xlane.xlu0 %318 }
 0x11c   :  { %v1455_v36 = vpop.xlane.xlu1 %324  ;;  %v1457_v37 = vpop.xlane.xlu0 %322 }
 0x120   :  { %v1459_v38 = vpop.xlane.xlu1 %328  ;;  %v1461_v39 = vpop.xlane.xlu0 %326 }
 0x124   :  { %v1463_v40 = vpop.xlane.xlu1 %332  ;;  %v1465_v41 = vpop.xlane.xlu0 %330 }
 0x128   :  { %v1467_v42 = vpop.xlane.xlu1 %336  ;;  %v1469_v43 = vpop.xlane.xlu0 %334 }
 0x12c   :  { %v1471_v44 = vpop.xlane.xlu1 %340  ;;  %v1473_v45 = vpop.xlane.xlu0 %338 }
 0x130   :  { %v1475_v46 = vpop.permute.xlu1 %348  ;;  %v1477_v47 = vpop.permute.xlu0 %344 }
 0x131   :  { %v358_v48 = vmul.f32 %v1475_v46, %v297_v25  ;;  %v357_v49 = vmul.f32 %v1477_v47, %v295_v23  ;;  %v360_v50 = vmul.f32 %v1477_v47, %v301_v22  ;;  %v361_v51 = vmul.f32 %v1475_v46, %v303_v24 }
 0x132   :  { %v363_v56 = vmul.f32 %v1477_v47, %v307_v29  ;;  %v1489_v5 = vmul.f32 %v1475_v46, %v315_v33  ;;  %v1492_v6 = vmul.f32 %v1475_v46, %v309_v28  ;;  %v1502_v33 = vmul.f32 %v1477_v47, %v1453_v35 }
 0x133   :  { %v430_v52 = vand.u32 2147483647, %v358_v48  ;;  %v429_v54 = vand.u32 2147483647, %v357_v49  ;;  %v432_v55 = vand.u32 2147483647, %v360_v50 }
 0x134   :  { %v1483_v53 = vpop.permute.xlu1 %352  ;;  %v433_v61 = vand.u32 2147483647, %v361_v51  ;;  %v435_v2 = vand.u32 2147483647, %v363_v56  ;;  %v382_v7 = vsub.f32 0.0, %v358_v48  ;;  %v381_v13 = vsub.f32 0.0, %v357_v49 }
 0x135   :  { %v454_v57 = vsub.f32 0.0, %v430_v52  ;;  %v359_v58 = vmul.f32 %v1483_v53, %v299_v27  ;;  %v453_v59 = vsub.f32 0.0, %v429_v54  ;;  %v456_v60 = vsub.f32 0.0, %v432_v55 }
 0x136   :  { %v365_v3 = vmul.f32 %v1483_v53, %v311_v31  ;;  %v459_v8 = vsub.f32 0.0, %v435_v2  ;;  %v457_v9 = vsub.f32 0.0, %v433_v61  ;;  %v362_v12 = vmul.f32 %v1483_v53, %v305_v26 }
 0x137   :  { %v479_v62 = vmul.f32 1.442695, %v454_v57  ;;  %v431_v63 = vand.u32 2147483647, %v359_v58  ;;  %v477_v0 = vmul.f32 1.442695, %v453_v59 }
 0x138   :  { %v483_v1 = vmul.f32 1.442695, %v456_v60  ;;  %v437_v11 = vand.u32 2147483647, %v365_v3  ;;  %v489_v14 = vmul.f32 1.442695, %v459_v8 }
 0x139   :  { %1106 = vpow2.f32 %v479_v62  ;;  %v455_v4 = vsub.f32 0.0, %v431_v63  ;;  %v385_v15 = vsub.f32 0.0, %v361_v51  ;;  %v485_v16 = vmul.f32 1.442695, %v457_v9 }
 0x13a   :  { %1108 = vpow2.f32 %v477_v0  ;;  %v384_v19 = vsub.f32 0.0, %v360_v50  ;;  %v461_v20 = vsub.f32 0.0, %v437_v11  ;;  %v434_v21 = vand.u32 2147483647, %v362_v12 }
 0x13b   :  { %v481_v10 = vmul.f32 1.442695, %v455_v4  ;;  %1110 = vpow2.f32 %v483_v1  ;;  %v383_v22 = vsub.f32 0.0, %v359_v58  ;;  %v387_v23 = vsub.f32 0.0, %v363_v56 }
 0x13c   :  { %v439_v24 = vand.u32 2147483647, %v1489_v5  ;;  %v389_v25 = vsub.f32 0.0, %v365_v3  ;;  %v493_v27 = vmul.f32 1.442695, %v461_v20  ;;  %v458_v28 = vsub.f32 0.0, %v434_v21 }
 0x13d   :  { %1112 = vpow2.f32 %v481_v10  ;;  %v1496_v29 = vmax.f32 %v382_v7, 0.0  ;;  %v1498_v26 = vmax.f32 %v381_v13, 0.0  ;;  %v1504_v48 = vmax.f32 %v384_v19, 0.0 }
 0x13e   :  { %1114 = vpow2.f32 %v489_v14  ;;  %v463_v31 = vsub.f32 0.0, %v439_v24  ;;  %v487_v49 = vmul.f32 1.442695, %v458_v28  ;;  %v436_v50 = vand.u32 2147483647, %v1492_v6 }
 0x13f   :  { %1116 = vpow2.f32 %v485_v16  ;;  %v1507_v51 = vmax.f32 %v383_v22, 0.0  ;;  %v1509_v52 = vmax.f32 %v387_v23, 0.0  ;;  %v386_v54 = vsub.f32 0.0, %v362_v12 }
 0x140   :  { %1118 = vpow2.f32 %v493_v27  ;;  %v497_v55 = vmul.f32 1.442695, %v463_v31  ;;  %v1511_v57 = vmax.f32 %v385_v15, 0.0  ;;  %v1513_v58 = vmax.f32 %v389_v25, 0.0 }
 0x141   :  { %1120 = vpow2.f32 %v487_v49  ;;  %v441_v61 = vand.u32 2147483647, %v1502_v33  ;;  %v1519_v62 = vmul.f32 %v1477_v47, %v1447_v30  ;;  %v460_v3 = vsub.f32 0.0, %v436_v50 }
 0x142   :  { %1122 = vpow2.f32 %v497_v55  ;;  %v1521_v8 = vmax.f32 %v386_v54, 0.0  ;;  %v1525_v12 = vmul.f32 %v1483_v53, %v1457_v37 }
 0x143   :  { %v1107_v56 = vpop.eup %1106  ;;  %v1527_v15 = vsub.f32 0.0, %v441_v61  ;;  %v438_v16 = vand.u32 2147483647, %v1519_v62  ;;  %v491_v22 = vmul.f32 1.442695, %v460_v3 }
 0x144   :  { %v1109_v59 = vpop.eup %1108  ;;  %v534_v60 = vadd.f32 1.0, %v1107_v56  ;;  %v537_v0 = vmul.f32 -0.5, %v1107_v56  ;;  %v540_v4 = vand.u32 2147483647, %v1107_v56 }
 0x145   :  { %v1111_v63 = vpop.eup %1110  ;;  %v525_v1 = vadd.f32 1.0, %v1109_v59  ;;  %v528_v2 = vmul.f32 -0.5, %v1109_v59  ;;  %v531_v10 = vand.u32 2147483647, %v1109_v59 }
 0x146   :  { %1124 = vlog2.f32 %v534_v60  ;;  %v552_v7 = vadd.f32 1.0, %v1111_v63  ;;  %v555_v11 = vmul.f32 -0.5, %v1111_v63  ;;  %v538_v20 = vadd.f32 1.0, %v537_v0 }
 0x147   :  { %v1113_v9 = vpop.eup %1112  ;;  %1126 = vlog2.f32 %v525_v1  ;;  %v529_v21 = vadd.f32 1.0, %v528_v2  ;;  %vm1530_vm1 = vcmp.lt.f32.partialorder %v540_v4, 0.0004427343  ;;  %vm1534_vm2 = vcmp.lt.f32.partialorder %v531_v10, 0.0004427343 }
 0x148   :  { %v1115_v30 = vpop.eup %1114  ;;  %v543_v13 = vadd.f32 1.0, %v1113_v9  ;;  %v546_v14 = vmul.f32 -0.5, %v1113_v9  ;;  %1128 = vlog2.f32 %v552_v7  ;;  %v549_v24 = vand.u32 2147483647, %v1113_v9 }
 0x149   :  { %v1117_v19 = vpop.eup %1116  ;;  %v579_v37 = vadd.f32 1.0, %v1115_v30  ;;  %v556_v31 = vadd.f32 1.0, %v555_v11  ;;  %v558_v49 = vand.u32 2147483647, %v1111_v63  ;;  %v582_v50 = vmul.f32 -0.5, %v1115_v30 }
 0x14a   :  { %1130 = vlog2.f32 %v543_v13  ;;  %v1119_v25 = vpop.eup %1118  ;;  %v547_v28 = vadd.f32 1.0, %v546_v14  ;;  %v585_v54 = vand.u32 2147483647, %v1115_v30  ;;  %v561_v55 = vadd.f32 1.0, %v1117_v19 }
 0x14b   :  { %1132 = vlog2.f32 %v579_v37  ;;  %v564_v60 = vmul.f32 -0.5, %v1117_v19  ;;  %v1538_v61 = vpop.eup %1120  ;;  %v539_v0 = vmul.f32 %v1107_v56, %v538_v20  ;;  %v530_v1 = vmul.f32 %v1109_v59, %v529_v21 }
 0x14c   :  { %v583_v2 = vadd.f32 1.0, %v582_v50  ;;  %v597_v3 = vadd.f32 1.0, %v1119_v25  ;;  %v1540_v4 = vpop.eup %1122  ;;  %vm1542_vm3 = vcmp.lt.f32.partialorder %v549_v24, 0.0004427343  ;;  %1134 = vlog2.f32 %v561_v55 }
 0x14d   :  { %v565_v10 = vadd.f32 1.0, %v564_v60  ;;  %v567_v11 = vand.u32 2147483647, %v1117_v19  ;;  %v600_v13 = vmul.f32 -0.5, %v1119_v25  ;;  %v557_v14 = vmul.f32 %v1111_v63, %v556_v31 }
 0x14e   :  { %1136 = vlog2.f32 %v597_v3  ;;  %v603_v37 = vand.u32 2147483647, %v1119_v25  ;;  %v570_v17 = vadd.f32 1.0, %v1538_v61  ;;  %v548_v56 = vmul.f32 %v1113_v9, %v547_v28 }
 0x14f   :  { %vm1547_vm4 = vcmp.lt.f32.partialorder %v558_v49, 0.0004427343  ;;  %vm1551_vm5 = vcmp.lt.f32.partialorder %v585_v54, 0.0004427343  ;;  %v601_v21 = vadd.f32 1.0, %v600_v13  ;;  %v573_v63 = vmul.f32 -0.5, %v1538_v61 }
 0x150   :  { %v1125_v35 = vpop.eup %1124  ;;  %1138 = vlog2.f32 %v570_v17  ;;  %v615_v31 = vadd.f32 1.0, %v1540_v4  ;;  %v584_v60 = vmul.f32 %v1115_v30, %v583_v2  ;;  %v566_v3 = vmul.f32 %v1117_v19, %v565_v10 }
 0x151   :  { %v1127_v24 = vpop.eup %1126  ;;  %v536_v50 = vmul.f32 0.6931472, %v1125_v35  ;;  %vm1557_vm6 = vcmp.lt.f32.partialorder %v567_v11, 0.0004427343  ;;  %vm1563_vm7 = vcmp.lt.f32.partialorder %v603_v37, 0.0004427343  ;;  %v602_v2 = vmul.f32 %v1119_v25, %v601_v21 }
 0x152   :  { %v527_v55 = vmul.f32 0.6931472, %v1127_v24  ;;  %v1129_v28 = vpop.eup %1128  ;;  %v576_v17 = vand.u32 2147483647, %v1538_v61  ;;  %1140 = vlog2.f32 %v615_v31  ;;  %v574_v23 = vadd.f32 1.0, %v573_v63 }
 0x153   :  { %v542_v49 = vsel %vm1530_vm1, %v539_v0, %v536_v50  ;;  %v554_v19 = vmul.f32 0.6931472, %v1129_v28  ;;  %v618_v0 = vmul.f32 -0.5, %v1540_v4  ;;  %1142 = vpow2.f32 %v491_v22 }
 0x154   :  { %v1131_v35 = vpop.eup %1130  ;;  %v742_v13 = vadd.f32 %v542_v49, %v1496_v29  ;;  %v533_v30 = vsel %vm1534_vm2, %v530_v1, %v527_v55  ;;  %v501_v31 = vmul.f32 1.442695, %v1527_v15  ;;  %vm1580_vm8 = vcmp.lt.f32.partialorder %v576_v17, 0.0004427343 }
 0x155   :  { %v741_v10 = vadd.f32 %v533_v30, %v1498_v26  ;;  %v545_v11 = vmul.f32 0.6931472, %v1131_v35  ;;  %v1133_v37 = vpop.eup %1132  ;;  %v560_v50 = vsel %vm1547_vm4, %v557_v14, %v554_v19  ;;  %v621_v14 = vand.u32 2147483647, %v1540_v4 }
 0x156   :  { %v766_v24 = vsub.f32 0.0, %v742_v13  ;;  %v744_v25 = vadd.f32 %v560_v50, %v1504_v48  ;;  %v581_v1 = vmul.f32 0.6931472, %v1133_v37  ;;  %v1135_v26 = vpop.eup %1134  ;;  %1144 = vpow2.f32 %v501_v31 }
 0x157   :  { %v765_v29 = vsub.f32 0.0, %v741_v10  ;;  %v551_v27 = vsel %vm1542_vm3, %v548_v56, %v545_v11  ;;  %v563_v7 = vmul.f32 0.6931472, %v1135_v26  ;;  %v619_v56 = vadd.f32 1.0, %v618_v0 }
 0x158   :  { %817 = vperm.xlu0 %1105, %v766_v24   ;;  %v743_v21 = vadd.f32 %v551_v27, %v1507_v51  ;;  %v1137_v22 = vpop.eup %1136  ;;  %v587_v15 = vsel %vm1551_vm5, %v584_v60, %v581_v1  ;;  %v462_v48 = vsub.f32 0.0, %v438_v16  ;;  %v768_v55 = vsub.f32 0.0, %v744_v25 }
 0x159   :  { %814 = vperm.xlu1 %1104, %v765_v29   ;;  %v747_v51 = vadd.f32 %v587_v15, %v1509_v52  ;;  %v599_v28 = vmul.f32 0.6931472, %v1137_v22  ;;  %v569_v17 = vsel %vm1557_vm6, %v566_v3, %v563_v7  ;;  %v443_v13 = vand.u32 2147483647, %v1525_v12 }
 0x15a   :  { %v767_v59 = vsub.f32 0.0, %v743_v21  ;;  %v1139_v49 = vpop.eup %1138  ;;  %v495_v35 = vmul.f32 1.442695, %v462_v48  ;;  %v1595_v20 = vmul.f32 %v1483_v53, %v1449_v32  ;;  %v745_v60 = vadd.f32 %v569_v17, %v1511_v57 }
 0x15b   :  { %v605_v16 = vsel %vm1563_vm7, %v602_v2, %v599_v28  ;;  %v572_v30 = vmul.f32 0.6931472, %v1139_v49  ;;  %v575_v52 = vmul.f32 %v1538_v61, %v574_v23  ;;  %vm1602_vm9 = vcmp.lt.f32.partialorder %v621_v14, 0.0004427343 }
 0x15c   :  { %820 = vperm.xlu0 %1105, %v767_v59   ;;  %v1141_v19 = vpop.eup %1140  ;;  %v749_v3 = vadd.f32 %v605_v16, %v1513_v58  ;;  %1146 = vpow2.f32 %v495_v35  ;;  %v467_v32 = vsub.f32 0.0, %v443_v13  ;;  %v771_v10 = vsub.f32 0.0, %v747_v51 }
 0x15d   :  { %823 = vperm.xlu1 %1104, %v768_v55   ;;  %v578_v57 = vsel %vm1580_vm8, %v575_v52, %v572_v30  ;;  %v617_v11 = vmul.f32 0.6931472, %v1141_v19  ;;  %v620_v54 = vmul.f32 %v1540_v4, %v619_v56  ;;  %v769_v2 = vsub.f32 0.0, %v745_v60  ;;  %v1143_v58 = vpop.eup %1142 }
 0x15e   :  { %v746_v61 = vadd.f32 %v578_v57, %v1521_v8  ;;  %v505_v23 = vmul.f32 1.442695, %v467_v32  ;;  %v440_v0 = vand.u32 2147483647, %v1595_v20  ;;  %v1838_v37 = vsub.f32 0.0, %v1489_v5 }
 0x15f   :  { %v623_v50 = vsel %vm1602_vm9, %v620_v54, %v617_v11  ;;  %v773_v31 = vsub.f32 0.0, %v749_v3  ;;  %v388_v29 = vsub.f32 0.0, %v1492_v6  ;;  %v588_v27 = vadd.f32 1.0, %v1143_v58 }
 0x160   :  { %832 = vperm.xlu0 %1105, %v771_v10   ;;  %v415_v24 = vmax.f32 %v1838_v37, 0.0  ;;  %v1618_v4 = vmul.f32 %v1475_v46, %v1461_v39  ;;  %v1620_v8 = vpop.eup %1144  ;;  %1148 = vpow2.f32 %v505_v23  ;;  %v464_v1 = vsub.f32 0.0, %v440_v0 }
 0x161   :  { %826 = vperm.xlu1 %1104, %v769_v2   ;;  %v1624_v5 = vmul.f32 %v1475_v46, %v1451_v34  ;;  %v770_v26 = vsub.f32 0.0, %v746_v61  ;;  %1150 = vlog2.f32 %v588_v27  ;;  %v633_v21 = vadd.f32 1.0, %v1620_v8 }
 0x162   :  { %v751_v25 = vadd.f32 %v623_v50, %v415_v24  ;;  %v393_v6 = vsub.f32 0.0, %v1502_v33  ;;  %v390_v39 = vsub.f32 0.0, %v1519_v62  ;;  %v499_v63 = vmul.f32 1.442695, %v464_v1 }
 0x163   :  { %1152 = vlog2.f32 %v633_v21  ;;  %v445_v14 = vand.u32 2147483647, %v1618_v4  ;;  %v412_v15 = vmax.f32 %v388_v29, 0.0  ;;  %v591_v7 = vmul.f32 -0.5, %v1143_v58 }
 0x164   :  { %838 = vperm.xlu0 %1105, %v773_v31   ;;  %v775_v22 = vsub.f32 0.0, %v751_v25  ;;  %v442_v34 = vand.u32 2147483647, %v1624_v5  ;;  %v636_v48 = vmul.f32 -0.5, %v1620_v8  ;;  %1154 = vpow2.f32 %v499_v63 }
 0x165   :  { %829 = vperm.xlu1 %1104, %v770_v26   ;;  %v469_v59 = vsub.f32 0.0, %v445_v14  ;;  %v1636_v33 = vmul.f32 %v1477_v47, %v1465_v41  ;;  %v594_v62 = vand.u32 2147483647, %v1143_v58  ;;  %v417_v55 = vmax.f32 %v393_v6, 0.0 }
 0x166   :  { %v1631_v56 = vpop.eup %1146  ;;  %v1641_v28 = vmul.f32 %v1477_v47, %v1455_v36  ;;  %v1643_v49 = vmax.f32 %v390_v39, 0.0  ;;  %v395_v17 = vsub.f32 0.0, %v1525_v12  ;;  %v466_v13 = vsub.f32 0.0, %v442_v34 }
 0x167   :  { %v606_v51 = vadd.f32 1.0, %v1631_v56  ;;  %v509_v35 = vmul.f32 1.442695, %v469_v59  ;;  %v592_v60 = vadd.f32 1.0, %v591_v7  ;;  %v392_v41 = vsub.f32 0.0, %v1595_v20 }
 0x168   :  { %844 = vperm.xlu0 %1105, %v775_v22   ;;  %v447_v16 = vand.u32 2147483647, %v1636_v33  ;;  %v637_v30 = vadd.f32 1.0, %v636_v48  ;;  %v609_v52 = vmul.f32 -0.5, %v1631_v56  ;;  %v503_v19 = vmul.f32 1.442695, %v466_v13 }
 0x169   :  { %1156 = vlog2.f32 %v606_v51  ;;  %vm1651_vm10 = vcmp.lt.f32.partialorder %v594_v62, 0.0004427343  ;;  %v397_v12 = vsub.f32 0.0, %v1618_v4  ;;  %v444_v32 = vand.u32 2147483647, %v1641_v28 }
 0x16a   :  { %1158 = vpow2.f32 %v509_v35  ;;  %v1649_v3 = vpop.eup %1148  ;;  %v471_v9 = vsub.f32 0.0, %v447_v16  ;;  %v639_v20 = vand.u32 2147483647, %v1620_v8  ;;  %v1661_v11 = vmul.f32 %v1483_v53, %v1469_v43 }
 0x16b   :  { %v1151_v10 = vpop.eup %1150  ;;  %v651_v57 = vadd.f32 1.0, %v1649_v3  ;;  %1160 = vpow2.f32 %v503_v19  ;;  %v593_v2 = vmul.f32 %v1143_v58, %v592_v60  ;;  %v468_v23 = vsub.f32 0.0, %v444_v32 }
 0x16c   :  { %v590_v54 = vmul.f32 0.6931472, %v1151_v10  ;;  %v513_v61 = vmul.f32 1.442695, %v471_v9  ;;  %v638_v37 = vmul.f32 %v1620_v8, %v637_v30  ;;  %v610_v24 = vadd.f32 1.0, %v609_v52 }
 0x16d   :  { %v1153_v0 = vpop.eup %1152  ;;  %1162 = vlog2.f32 %v651_v57  ;;  %v654_v50 = vmul.f32 -0.5, %v1649_v3  ;;  %v507_v27 = vmul.f32 1.442695, %v468_v23  ;;  %vm640_vm11 = vcmp.lt.f32.partialorder %v639_v20, 0.0004427343 }
 0x16e   :  { %v596_v31 = vsel %vm1651_vm10, %v593_v2, %v590_v54  ;;  %v635_v29 = vmul.f32 0.6931472, %v1153_v0  ;;  %1164 = vpow2.f32 %v513_v61  ;;  %v1667_v4 = vpop.eup %1154  ;;  %v394_v58 = vsub.f32 0.0, %v1624_v5 }
 0x16f   :  { %v748_v43 = vadd.f32 %v596_v31, %v412_v15  ;;  %v449_v25 = vand.u32 2147483647, %v1661_v11  ;;  %v612_v8 = vand.u32 2147483647, %v1631_v56  ;;  %v624_v26 = vadd.f32 1.0, %v1667_v4 }
 0x170   :  { %v641_v1 = vsel %vm640_vm11, %v638_v37, %v635_v29  ;;  %v399_v21 = vsub.f32 0.0, %v1636_v33  ;;  %1166 = vpow2.f32 %v507_v27  ;;  %v611_v22 = vmul.f32 %v1631_v56, %v610_v24 }
 0x171   :  { %v772_v6 = vsub.f32 0.0, %v748_v43  ;;  %v753_v39 = vadd.f32 %v641_v1, %v417_v55  ;;  %v473_v63 = vsub.f32 0.0, %v449_v25  ;;  %v655_v15 = vadd.f32 1.0, %v654_v50 }
 0x172   :  { %1168 = vlog2.f32 %v624_v26  ;;  %v1677_v5 = vmul.f32 %v1483_v53, %v1459_v38  ;;  %v627_v59 = vmul.f32 -0.5, %v1667_v4  ;;  %vm613_vm12 = vcmp.lt.f32.partialorder %v612_v8, 0.0004427343 }
 0x173   :  { %v1157_v14 = vpop.eup %1156  ;;  %835 = vperm.xlu1 %1104, %v772_v6   ;;  %v777_v34 = vsub.f32 0.0, %v753_v39  ;;  %v517_v33 = vmul.f32 1.442695, %v473_v63  ;;  %v419_v62 = vmax.f32 %v395_v17, 0.0  ;;  %v416_v55 = vmax.f32 %v392_v41, 0.0 }
 0x174   :  { %v1679_v7 = vpop.eup %1158  ;;  %v608_v48 = vmul.f32 0.6931472, %v1157_v14  ;;  %v657_v38 = vand.u32 2147483647, %v1649_v3  ;;  %v446_v13 = vand.u32 2147483647, %v1677_v5  ;;  %v656_v41 = vmul.f32 %v1649_v3, %v655_v15 }
 0x175   :  { %v669_v51 = vadd.f32 1.0, %v1679_v7  ;;  %v1683_v56 = vpop.eup %1160  ;;  %850 = vperm.xlu0 %1105, %v777_v34   ;;  %1170 = vpow2.f32 %v517_v33  ;;  %v1688_v16 = vmax.f32 %v397_v12, 0.0  ;;  %v1690_v30 = vmax.f32 %v394_v58, 0.0 }
 0x176   :  { %v614_v35 = vsel %vm613_vm12, %v611_v22, %v608_v48  ;;  %v628_v52 = vadd.f32 1.0, %v627_v59  ;;  %v642_v19 = vadd.f32 1.0, %v1683_v56  ;;  %v1694_v36 = vmax.f32 %v399_v21, 0.0 }
 0x177   :  { %v750_v60 = vadd.f32 %v614_v35, %v1643_v49  ;;  %1172 = vlog2.f32 %v669_v51  ;;  %v1163_v17 = vpop.eup %1162  ;;  %v672_v20 = vmul.f32 -0.5, %v1679_v7  ;;  %v470_v49 = vsub.f32 0.0, %v446_v13 }
 0x178   :  { %v1696_v9 = vpop.eup %1164  ;;  %v653_v10 = vmul.f32 0.6931472, %v1163_v17  ;;  %vm658_vm13 = vcmp.lt.f32.partialorder %v657_v38, 0.0004427343  ;;  %1174 = vlog2.f32 %v642_v19  ;;  %v396_v57 = vsub.f32 0.0, %v1641_v28 }
 0x179   :  { %v774_v32 = vsub.f32 0.0, %v750_v60  ;;  %v687_v12 = vadd.f32 1.0, %v1696_v9  ;;  %v630_v54 = vand.u32 2147483647, %v1667_v4  ;;  %v645_v2 = vmul.f32 -0.5, %v1683_v56 }
 0x17a   :  { %v659_v3 = vsel %vm658_vm13, %v656_v41, %v653_v10  ;;  %v511_v61 = vmul.f32 1.442695, %v470_v49  ;;  %v1703_v23 = vpop.eup %1166  ;;  %v629_v37 = vmul.f32 %v1667_v4, %v628_v52  ;;  %v1708_v24 = vmul.f32 %v1475_v46, %v1473_v45 }
 0x17b   :  { %841 = vperm.xlu1 %1104, %v774_v32   ;;  %v755_v0 = vadd.f32 %v659_v3, %v419_v62  ;;  %1176 = vlog2.f32 %v687_v12  ;;  %v673_v31 = vadd.f32 1.0, %v672_v20  ;;  %v675_v28 = vand.u32 2147483647, %v1679_v7 }
 0x17c   :  { %v1169_v50 = vpop.eup %1168  ;;  %v648_v29 = vand.u32 2147483647, %v1683_v56  ;;  %v660_v27 = vadd.f32 1.0, %v1703_v23  ;;  %v690_v25 = vmul.f32 -0.5, %v1696_v9  ;;  %1178 = vpow2.f32 %v511_v61 }
 0x17d   :  { %v779_v43 = vsub.f32 0.0, %v755_v0  ;;  %v626_v58 = vmul.f32 0.6931472, %v1169_v50  ;;  %vm631_vm14 = vcmp.lt.f32.partialorder %v630_v54, 0.0004427343  ;;  %v646_v4 = vadd.f32 1.0, %v645_v2 }
 0x17e   :  { %v1714_v1 = vmax.f32 %v396_v57, 0.0  ;;  %1180 = vlog2.f32 %v660_v27  ;;  %v663_v26 = vmul.f32 -0.5, %v1703_v23  ;;  %v451_v21 = vand.u32 2147483647, %v1708_v24 }
 0x17f   :  { %v1716_v45 = vpop.eup %1170  ;;  %856 = vperm.xlu0 %1105, %v779_v43   ;;  %v632_v8 = vsel %vm631_vm14, %v629_v37, %v626_v58  ;;  %v1722_v6 = vmul.f32 %v1475_v46, %v1463_v40  ;;  %v674_v14 = vmul.f32 %v1679_v7, %v673_v31  ;;  %vm1725_vm15 = vcmp.lt.f32.partialorder %v675_v28, 0.0004427343 }
 0x180   :  { %v752_v63 = vadd.f32 %v632_v8, %v416_v55  ;;  %v705_v15 = vadd.f32 1.0, %v1716_v45  ;;  %vm1730_vm0 = vcmp.lt.f32.partialorder %v648_v29, 0.0004427343  ;;  %v691_v59 = vadd.f32 1.0, %v690_v25 }
 0x181   :  { %v1173_v39 = vpop.eup %1172  ;;  %v475_v33 = vsub.f32 0.0, %v451_v21  ;;  %v693_v40 = vand.u32 2147483647, %v1696_v9  ;;  %v448_v46 = vand.u32 2147483647, %v1722_v6  ;;  %v647_v51 = vmul.f32 %v1683_v56, %v646_v4 }
 0x182   :  { %v671_v34 = vmul.f32 0.6931472, %v1173_v39  ;;  %v776_v62 = vsub.f32 0.0, %v752_v63  ;;  %1182 = vlog2.f32 %v705_v15  ;;  %v1175_v7 = vpop.eup %1174  ;;  %v664_v35 = vadd.f32 1.0, %v663_v26 }
 0x183   :  { %v521_v38 = vmul.f32 1.442695, %v475_v33  ;;  %v644_v60 = vmul.f32 0.6931472, %v1175_v7  ;;  %v708_v17 = vmul.f32 -0.5, %v1716_v45  ;;  %v472_v41 = vsub.f32 0.0, %v448_v46 }
 0x184   :  { %v677_v55 = vsel %vm1725_vm15, %v674_v14, %v671_v34  ;;  %847 = vperm.xlu1 %1104, %v776_v62   ;;  %v692_v19 = vmul.f32 %v1696_v9, %v691_v59  ;;  %v666_v32 = vand.u32 2147483647, %v1703_v23  ;;  %v1745_v10 = vmul.f32 %v1477_v47, %v1467_v42 }
 0x185   :  { %v757_v13 = vadd.f32 %v677_v55, %v1688_v16  ;;  %v1177_v52 = vpop.eup %1176  ;;  %1184 = vpow2.f32 %v521_v38  ;;  %v650_v20 = vsel %vm1730_vm0, %v647_v51, %v644_v60  ;;  %v515_v16 = vmul.f32 1.442695, %v472_v41 }
 0x186   :  { %v689_v49 = vmul.f32 0.6931472, %v1177_v52  ;;  %v1179_v12 = vpop.eup %1178  ;;  %v754_v57 = vadd.f32 %v650_v20, %v1690_v30  ;;  %vm694_vm1 = vcmp.lt.f32.partialorder %v693_v40, 0.0004427343  ;;  %v665_v3 = vmul.f32 %v1703_v23, %v664_v35 }
 0x187   :  { %v781_v56 = vsub.f32 0.0, %v757_v13  ;;  %v450_v9 = vand.u32 2147483647, %v1745_v10  ;;  %v709_v61 = vadd.f32 1.0, %v708_v17  ;;  %v678_v42 = vadd.f32 1.0, %v1179_v12 }
 0x188   :  { %v1181_v54 = vpop.eup %1180  ;;  %v695_v2 = vsel %vm694_vm1, %v692_v19, %v689_v49  ;;  %v1754_v47 = vmul.f32 %v1483_v53, %v1471_v44  ;;  %v778_v0 = vsub.f32 0.0, %v754_v57  ;;  %1186 = vpow2.f32 %v515_v16 }
 0x189   :  { %862 = vperm.xlu0 %1105, %v781_v56   ;;  %v759_v37 = vadd.f32 %v695_v2, %v1694_v36  ;;  %v662_v50 = vmul.f32 0.6931472, %v1181_v54  ;;  %vm667_vm2 = vcmp.lt.f32.partialorder %v666_v32, 0.0004427343  ;;  %v401_v30 = vsub.f32 0.0, %v1661_v11 }
 0x18a   :  { %v711_v23 = vand.u32 2147483647, %v1716_v45  ;;  %1188 = vlog2.f32 %v678_v42  ;;  %853 = vperm.xlu1 %1104, %v778_v0   ;;  %v474_v29 = vsub.f32 0.0, %v450_v9  ;;  %v452_v44 = vand.u32 2147483647, %v1754_v47 }
 0x18b   :  { %v783_v31 = vsub.f32 0.0, %v759_v37  ;;  %v668_v28 = vsel %vm667_vm2, %v665_v3, %v662_v50  ;;  %v710_v36 = vmul.f32 %v1716_v45, %v709_v61  ;;  %v681_v58 = vmul.f32 -0.5, %v1179_v12 }
 0x18c   :  { %v1183_v27 = vpop.eup %1182  ;;  %v756_v43 = vadd.f32 %v668_v28, %v1714_v1  ;;  %v519_v25 = vmul.f32 1.442695, %v474_v29  ;;  %v425_v11 = vmax.f32 %v401_v30, 0.0  ;;  %vm712_vm3 = vcmp.lt.f32.partialorder %v711_v23, 0.0004427343 }
 0x18d   :  { %868 = vperm.xlu0 %1105, %v783_v31   ;;  %v707_v53 = vmul.f32 0.6931472, %v1183_v27  ;;  %v476_v8 = vsub.f32 0.0, %v452_v44  ;;  %v682_v14 = vadd.f32 1.0, %v681_v58  ;;  %v398_v15 = vsub.f32 0.0, %v1677_v5 }
 0x18e   :  { %v780_v4 = vsub.f32 0.0, %v756_v43  ;;  %1190 = vpow2.f32 %v519_v25  ;;  %v684_v34 = vand.u32 2147483647, %v1179_v12  ;;  %v403_v35 = vsub.f32 0.0, %v1708_v24 }
 0x18f   :  { %v1185_v26 = vpop.eup %1184  ;;  %v713_v21 = vsel %vm712_vm3, %v710_v36, %v707_v53  ;;  %v523_v1 = vmul.f32 1.442695, %v476_v8  ;;  %v683_v62 = vmul.f32 %v1179_v12, %v682_v14  ;;  %v422_v46 = vmax.f32 %v398_v15, 0.0 }
 0x190   :  { %859 = vperm.xlu1 %1104, %v780_v4   ;;  %v761_v39 = vadd.f32 %v713_v21, %v425_v11  ;;  %v723_v63 = vadd.f32 1.0, %v1185_v26  ;;  %v726_v40 = vmul.f32 -0.5, %v1185_v26  ;;  %vm685_vm4 = vcmp.lt.f32.partialorder %v684_v34, 0.0004427343 }
 0x191   :  { %v729_v60 = vand.u32 2147483647, %v1185_v26  ;;  %v427_v19 = vmax.f32 %v403_v35, 0.0  ;;  %v400_v49 = vsub.f32 0.0, %v1722_v6  ;;  %v402_v23 = vsub.f32 0.0, %v1745_v10 }
 0x192   :  { %v785_v22 = vsub.f32 0.0, %v761_v39  ;;  %1192 = vlog2.f32 %v723_v63  ;;  %v1187_v45 = vpop.eup %1186  ;;  %v727_v38 = vadd.f32 1.0, %v726_v40  ;;  %v404_v53 = vsub.f32 0.0, %v1754_v47 }
 0x193   :  { %1194 = vpow2.f32 %v523_v1  ;;  %v696_v59 = vadd.f32 1.0, %v1187_v45  ;;  %v699_v5 = vmul.f32 -0.5, %v1187_v45  ;;  %vm730_vm5 = vcmp.lt.f32.partialorder %v729_v60, 0.0004427343 }
 0x194   :  { %v1189_v48 = vpop.eup %1188  ;;  %874 = vperm.xlu0 %1105, %v785_v22   ;;  %v728_v56 = vmul.f32 %v1185_v26, %v727_v38  ;;  %v702_v16 = vand.u32 2147483647, %v1187_v45  ;;  %v424_v42 = vmax.f32 %v400_v49, 0.0  ;;  %v426_v44 = vmax.f32 %v402_v23, 0.0 }
 0x195   :  { %v680_v33 = vmul.f32 0.6931472, %v1189_v48  ;;  %1196 = vlog2.f32 %v696_v59  ;;  %v700_v20 = vadd.f32 1.0, %v699_v5  ;;  %v428_v21 = vmax.f32 %v404_v53, 0.0 }
 0x196   :  { %vm703_vm6 = vcmp.lt.f32.partialorder %v702_v16, 0.0004427343  ;;  %v1845_v38 = vlaneseq  ;;  %v896_v60 = vadd.s32 4294967280, %v1444_v18  ;;  %vm894_vm9 = vcmask 130112  }
 0x197   :  { %v686_v7 = vsel %vm685_vm4, %v683_v62, %v680_v33  ;;  %v701_v2 = vmul.f32 %v1187_v45, %v700_v20  ;;  %vm901_vm10 = vcmask 195712   ;;  %vm1001_vm11 = vcmask 1041409  }
 0x198   :  { %v758_v55 = vadd.f32 %v686_v7, %v422_v46  ;;  %v1191_v51 = vpop.eup %1190  ;;  %v886_v5 = vshrl.u32 %v1845_v38, 7  ;;  %vm1003_vm12 = vcmask 1042434   ;;  %vm1005_vm13 = vcmask 1043459  }
 0x199   :  { %v714_v17 = vadd.f32 1.0, %v1191_v51  ;;  %v717_v24 = vmul.f32 -0.5, %v1191_v51  ;;  %v720_v6 = vand.u32 2147483647, %v1191_v51  ;;  %vm1007_vm14 = vcmask 1044484  }
 0x19a   :  { %v782_v13 = vsub.f32 0.0, %v758_v55  ;;  %vm1009_vm15 = vcmask 1045509   ;;  %vm1011_vm0 = vcmask 1046534   ;;  %vm1013_vm1 = vcmask 1047559  }
 0x19b   :  { %1198 = vlog2.f32 %v714_v17  ;;  %v718_v37 = vadd.f32 1.0, %v717_v24  ;;  %vm721_vm7 = vcmp.lt.f32.partialorder %v720_v6, 0.0004427343  ;;  %v1771_v17 = vsub.s32 %v1444_v18, %v886_v5 }
 0x19c   :  { %v1193_v41 = vpop.eup %1192  ;;  %865 = vperm.xlu1 %1104, %v782_v13   ;;  %v889_v13 = vadd.s32 4294967288, %v1444_v18  ;;  %vm189_vm2 = vcmp.lt.s32.totalorder %v1444_v18, 24  ;;  %vm1017_vm3 = vcmask 195584   ;;  %vm1028_vm4 = vcmask 57344  }
 0x19d   :  { %v1195_v52 = vpop.eup %1194  ;;  %v725_v32 = vmul.f32 0.6931472, %v1193_v41  ;;  %v719_v27 = vmul.f32 %v1191_v51, %v718_v37 }
 0x19e   :  { %v732_v12 = vadd.f32 1.0, %v1195_v52  ;;  %v735_v50 = vmul.f32 -0.5, %v1195_v52  ;;  %v738_v36 = vand.u32 2147483647, %v1195_v52  ;;  %v892_v41 = vsub.s32 %v889_v13, %v886_v5 }
 0x19f   :  { %v731_v57 = vsel %vm730_vm5, %v728_v56, %v725_v32  ;;  %v1197_v3 = vpop.eup %1196  ;;  %v899_v32 = vsub.s32 %v896_v60, %v886_v5 }
 0x1a0   :  { %v763_v9 = vadd.f32 %v731_v57, %v427_v19  ;;  %1200 = vlog2.f32 %v732_v12  ;;  %v698_v54 = vmul.f32 0.6931472, %v1197_v3  ;;  %v736_v43 = vadd.f32 1.0, %v735_v50 }
 0x1a1   :  { %vm739_vm8 = vcmp.lt.f32.partialorder %v738_v36, 0.0004427343 }
 0x1a2   :  { %v787_v61 = vsub.f32 0.0, %v763_v9  ;;  %v704_v0 = vsel %vm703_vm6, %v701_v2, %v698_v54  ;;  %v737_v8 = vmul.f32 %v1195_v52, %v736_v43 }
 0x1a3   :  { %v760_v30 = vadd.f32 %v704_v0, %v424_v42 }
 0x1a4   :  { %880 = vperm.xlu0 %1105, %v787_v61  }
 0x1a5   :  { %v1199_v31 = vpop.eup %1198  ;;  %v784_v28 = vsub.f32 0.0, %v760_v30 }
 0x1a6   :  { %v716_v29 = vmul.f32 0.6931472, %v1199_v31 }
 0x1a7   :  { %871 = vperm.xlu1 %1104, %v784_v28  }
 0x1a8   :  { %v722_v58 = vsel %vm721_vm7, %v719_v27, %v716_v29 }
 0x1a9   :  { %v762_v4 = vadd.f32 %v722_v58, %v426_v44 }
 0x1aa   :  { %v1201_v25 = vpop.eup %1200 }
 0x1ab   :  { %v734_v11 = vmul.f32 0.6931472, %v1201_v25  ;;  %v786_v26 = vsub.f32 0.0, %v762_v4 }
 0x1ad   :  { %v740_v10 = vsel %vm739_vm8, %v737_v8, %v734_v11  ;;  %877 = vperm.xlu1 %1104, %v786_v26  }
 0x1ae   :  { %v764_v39 = vadd.f32 %v740_v10, %v428_v21 }
 0x1b0   :  { %v788_v63 = vsub.f32 0.0, %v764_v39 }
 0x1b2   :  { %883 = vperm.xlu1 %1104, %v788_v63  }
 0x1d7   :  { %v818_v22 = vpop.permute.xlu0 %817 }
 0x1d8   :  { %v815_v14 = vpop.permute.xlu1 %814  ;;  %v893_v20 = vrot.slane %v818_v22, %v892_v41 }
 0x1d9   :  { %v888_v56 = vrot.slane %v815_v14, %v1771_v17 }
 0x1db   :  { %v821_v34 = vpop.permute.xlu0 %820  ;;  %v895_v61 = vsel %vm894_vm9, %v893_v20, %v888_v56 }
 0x1dc   :  { %v824_v1 = vpop.permute.xlu1 %823  ;;  %v900_v3 = vrot.slane %v821_v34, %v899_v32 }
 0x1dd   :  { %v906_v12 = vrot.slane %v824_v1, %v1771_v17 }
 0x1de   :  { %v902_v27 = vsel %vm901_vm10, %v900_v3, %v895_v61 }
 0x1df   :  { %v833_v45 = vpop.permute.xlu0 %832 }
 0x1e0   :  { %v827_v15 = vpop.permute.xlu1 %826  ;;  %v920_v9 = vrot.slane %v833_v45, %v1771_v17 }
 0x1e1   :  { %v910_v49 = vrot.slane %v827_v15, %v892_v41 }
 0x1e3   :  { %v839_v59 = vpop.permute.xlu0 %838  ;;  %v911_v42 = vsel %vm894_vm9, %v910_v49, %v906_v12 }
 0x1e4   :  { %v830_v47 = vpop.permute.xlu1 %829  ;;  %v929_v31 = vrot.slane %v839_v59, %v899_v32 }
 0x1e5   :  { %v915_v57 = vrot.slane %v830_v47, %v899_v32 }
 0x1e7   :  { %v845_v62 = vpop.permute.xlu0 %844  ;;  %v916_v6 = vsel %vm901_vm10, %v915_v57, %v911_v42 }
 0x1e8   :  { %v938_v28 = vrot.slane %v845_v62, %v892_v41  ;;  %v1002_v8 = vsel %vm1001_vm11, %v916_v6, %v902_v27 }
 0x1f2   :  { %v836_v48 = vpop.permute.xlu1 %835 }
 0x1f3   :  { %v924_v16 = vrot.slane %v836_v48, %v892_v41 }
 0x1f4   :  { %v851_v46 = vpop.permute.xlu0 %850 }
 0x1f5   :  { %v925_v37 = vsel %vm894_vm9, %v924_v16, %v920_v9  ;;  %v948_v50 = vrot.slane %v851_v46, %v1771_v17 }
 0x1f6   :  { %v930_v36 = vsel %vm901_vm10, %v929_v31, %v925_v37 }
 0x1f7   :  { %v1004_v22 = vsel %vm1003_vm12, %v930_v36, %v1002_v8 }
 0x1fa   :  { %v842_v33 = vpop.permute.xlu1 %841 }
 0x1fb   :  { %v934_v0 = vrot.slane %v842_v33, %v1771_v17 }
 0x1fd   :  { %v939_v58 = vsel %vm894_vm9, %v938_v28, %v934_v0 }
 0x1fe   :  { %v857_v55 = vpop.permute.xlu0 %856 }
 0x1ff   :  { %v957_v25 = vrot.slane %v857_v55, %v899_v32 }
 0x203   :  { %v848_v40 = vpop.permute.xlu1 %847 }
 0x204   :  { %v943_v30 = vrot.slane %v848_v40, %v899_v32 }
 0x206   :  { %v944_v26 = vsel %vm901_vm10, %v943_v30, %v939_v58 }
 0x207   :  { %v1006_v34 = vsel %vm1005_vm13, %v944_v26, %v1004_v22 }
 0x208   :  { %v863_v35 = vpop.permute.xlu0 %862 }
 0x209   :  { %v854_v7 = vpop.permute.xlu1 %853  ;;  %v966_v4 = vrot.slane %v863_v35, %v892_v41 }
 0x20a   :  { %v952_v54 = vrot.slane %v854_v7, %v892_v41 }
 0x20c   :  { %v869_v19 = vpop.permute.xlu0 %868  ;;  %v953_v43 = vsel %vm894_vm9, %v952_v54, %v948_v50 }
 0x20d   :  { %v976_v44 = vrot.slane %v869_v19, %v1771_v17  ;;  %v958_v39 = vsel %vm901_vm10, %v957_v25, %v953_v43 }
 0x20e   :  { %v1008_v33 = vsel %vm1007_vm14, %v958_v39, %v1006_v34 }
 0x20f   :  { %v860_v51 = vpop.permute.xlu1 %859 }
 0x210   :  { %v962_v29 = vrot.slane %v860_v51, %v1771_v17 }
 0x212   :  { %v967_v63 = vsel %vm894_vm9, %v966_v4, %v962_v29 }
 0x213   :  { %v875_v2 = vpop.permute.xlu0 %874 }
 0x214   :  { %v985_v14 = vrot.slane %v875_v2, %v899_v32 }
 0x21b   :  { %v866_v52 = vpop.permute.xlu1 %865 }
 0x21c   :  { %v971_v53 = vrot.slane %v866_v52, %v899_v32 }
 0x21e   :  { %v972_v15 = vsel %vm901_vm10, %v971_v53, %v967_v63 }
 0x21f   :  { %v1010_v40 = vsel %vm1009_vm15, %v972_v15, %v1008_v33 }
 0x223   :  { %v881_v10 = vpop.permute.xlu0 %880 }
 0x224   :  { %v994_v47 = vrot.slane %v881_v10, %v892_v41 }
 0x226   :  { %v872_v24 = vpop.permute.xlu1 %871 }
 0x227   :  { %v980_v23 = vrot.slane %v872_v24, %v892_v41 }
 0x229   :  { %v981_v21 = vsel %vm894_vm9, %v980_v23, %v976_v44 }
 0x22a   :  { %v986_v48 = vsel %vm901_vm10, %v985_v14, %v981_v21 }
 0x22b   :  { %v1012_v7 = vsel %vm1011_vm0, %v986_v48, %v1010_v40 }
 0x22c   :  { %v878_v11 = vpop.permute.xlu1 %877 }
 0x22d   :  { %v990_v1 = vrot.slane %v878_v11, %v1771_v17 }
 0x22f   :  { %v995_v62 = vsel %vm894_vm9, %v994_v47, %v990_v1 }
 0x231   :  { %v884_v45 = vpop.permute.xlu1 %883 }
 0x232   :  { %v999_v59 = vrot.slane %v884_v45, %v899_v32 }
 0x234   :  { %v1000_v46 = vsel %vm901_vm10, %v999_v59, %v995_v62 }
 0x235   :  { %v1014_v55 = vsel %vm1013_vm1, %v1000_v46, %v1012_v7 }
 0x236   :  { %v1016_v51 = vsel %vm189_vm2, %v1014_v55, 0.0 }
 0x237   :  { %v1018_v35 = vsel %vm1017_vm3, %v1016_v51, 0.0 }
 0x238   :  { %1019 = vadd.xlane.f32.xlu0 %v1018_v35 }
 0x2c5   :  { %v1020_v38 = vpop.xlane.xlu0 %1019 }
 0x2c6   :  { %v1021_v5 = vsub.f32 0.0, %v1020_v38 }
 0x2c8   :  { %v1026_v13 = vrot.slane %v1021_v5, %v1771_v17 }
 0x2ca   :  { %1029 = vst.msk [vmem:[#allocation12] sm:$0x1] %vm1028_vm4, %v1026_v13 }
 0x2cb   :  { %1279 = shalt.err (!%p1276_p1)
}
 0x2cc   :  { %s1280_s24 = scalar_lea.hbm %s1817_s4, 16 }
 0x2cd   :  { %p1281_p2 = scmp.ne.s32.totalorder %s1817_s4, %s1280_s24  ;;  %p1284_p3 = scmp.lt.u32.totalorder %s1280_s24, %s1817_s4 }
 0x2cf   :  { %p1286_p4 = pnand %p1284_p3, %p1281_p2 }
 0x2d1   :  { %1289 = shalt.err (!%p1286_p4)
}
 0x2d2   :  { %1039 = dma.vmem_to_hbm [thread:$0]  %s1037_s29, 16, %s1817_s4, [#allocation9]  }
 0x2d3   :  { %1300 = dma.done.wait [#allocation9], 16  }
 0x2d4   :  { %1301 = vsyncadd [#allocation9], 4294967280 }
 0x2d5   :  { %1043 = vsyncpa [#allocation8], 1 }
 0x2d6   :  { %1044 = vsyncpa [#allocation11], 1 }
 0x2d7   :  { %1045 = vsyncpa [#allocation9], 1 }

</bundles_post_ra>
